<compile_context>
chip_gen: v5e
topology: v5e:2x2
jax: 0.10.0
libtpu: 0.0.40
codegen_flags: <defaults>
</compile_context>

<pallas_src>
import math
import jax
import jax.numpy as jnp
from jax.experimental import pallas as pl
from jax.experimental.pallas import tpu as pltpu


def _silu(x):
    return x * jax.nn.sigmoid(x)


def vae_kernel(
    x_ref,                      # (TB, D)   f32 flattened input block
    z_ref,                      # (TB, L)   f32 standard-normal noise block
    w1e_ref, b1e_ref,           # encoder fc1:       (D, 256) bf16, (1, 256) f32
    w2e_ref, b2e_ref,           # encoder fc2:       (256, 128) bf16, (1, 128) f32
    wmv_ref, bmv_ref,           # fused mean|logvar: (128, 2L) bf16, (1, 2L) f32
    w1d_ref, b1d_ref,           # decoder fc1:       (L, 128) bf16, (1, 128) f32
    w2d_ref, b2d_ref,           # decoder fc2:       (128, 256) bf16, (1, 256) f32
    w3d_ref, b3d_ref,           # decoder fc3:       (256, D) bf16, (1, D) f32
    out_ref,                    # (TB, D)   f32 decoded output block
    kl_ref,                     # (TB, 128) f32 per-row KL (broadcast across lanes)
):
    L = z_ref.shape[-1]

    x = x_ref[...]

    # ---- Encoder (bf16 MXU, f32 accumulation) ----
    h1 = _silu(jnp.dot(x.astype(jnp.bfloat16), w1e_ref[...],
                       preferred_element_type=jnp.float32) + b1e_ref[...])
    h2 = _silu(jnp.dot(h1.astype(jnp.bfloat16), w2e_ref[...],
                       preferred_element_type=jnp.float32) + b2e_ref[...])

    # Fused mean | log-variance projection, then slice.
    mv = (jnp.dot(h2.astype(jnp.bfloat16), wmv_ref[...],
                  preferred_element_type=jnp.float32) + bmv_ref[...])
    mu = mv[:, :L]
    log_sigma = mv[:, L:]
    sigma = jnp.exp(log_sigma)

    # ---- KL: per-row sum of -0.5 * (1 + log(sigma) - mu^2 - sigma) ----
    kl_rows = jnp.sum(-0.5 * (1.0 + log_sigma - mu * mu - sigma),
                      axis=1, keepdims=True)                       # (TB, 1)
    kl_ref[...] = jnp.broadcast_to(kl_rows, kl_ref.shape)          # lane-dense store

    # ---- Reparametrization ----
    rep = mu + sigma * z_ref[...]

    # ---- Decoder ----
    d1 = _silu(jnp.dot(rep.astype(jnp.bfloat16), w1d_ref[...],
                       preferred_element_type=jnp.float32) + b1d_ref[...])
    d2 = _silu(jnp.dot(d1.astype(jnp.bfloat16), w2d_ref[...],
                       preferred_element_type=jnp.float32) + b2d_ref[...])
    out = jnp.tanh(jnp.dot(d2.astype(jnp.bfloat16), w3d_ref[...],
                           preferred_element_type=jnp.float32) + b3d_ref[...])
    out_ref[...] = out


def make_linear_params(key, fan_in, fan_out):
    """PyTorch nn.Linear-style init: U(-1/sqrt(fan_in), 1/sqrt(fan_in)).
    Weight is stored already transposed as (fan_in, fan_out)."""
    kw, kb = jax.random.split(key)
    bound = 1.0 / math.sqrt(fan_in)
    w = jax.random.uniform(kw, (fan_in, fan_out), jnp.float32, -bound, bound)
    b = jax.random.uniform(kb, (1, fan_out), jnp.float32, -bound, bound)
    return w, b


def _pick_batch_block(B, max_tb=256):
    """Largest multiple-of-8 tile dividing B (<= max_tb); else take whole batch."""
    for tb in (256, 128, 64, 32, 16, 8):
        if tb <= max_tb and B % tb == 0:
            return tb
    return B


def vae_forward(x_nchw, params, z):
    B, C, H, W = x_nchw.shape
    D = C * H * W
    L = z.shape[1]
    x_flat = x_nchw.reshape(B, D).astype(jnp.float32)  # == torch.flatten(x, 1)

    (w1e, b1e, w2e, b2e, wmu, bmu, wvar, bvar,
     w1d, b1d, w2d, b2d, w3d, b3d) = params

    # Fuse mean / log-variance projections into one matmul.
    wmv = jnp.concatenate([wmu, wvar], axis=1)          # (128, 2L)
    bmv = jnp.concatenate([bmu, bvar], axis=1)          # (1, 2L)

    weights = [w.astype(jnp.bfloat16) for w in (w1e, w2e, wmv, w1d, w2d, w3d)]
    biases = [b.astype(jnp.float32) for b in (b1e, b2e, bmv, b1d, b2d, b3d)]

    TB = _pick_batch_block(B)
    nb = B // TB

    row_spec_D = pl.BlockSpec((TB, D), lambda i: (i, 0))
    row_spec_L = pl.BlockSpec((TB, L), lambda i: (i, 0))
    kl_spec = pl.BlockSpec((TB, 128), lambda i: (i, 0))

    def resident_spec(arr):
        # Constant block index => DMA'd once, stays VMEM-resident across steps.
        return pl.BlockSpec(arr.shape, lambda i: (0, 0))

    in_specs = [row_spec_D, row_spec_L]
    operands = [x_flat, z]
    for w, b in zip(weights, biases):
        in_specs += [resident_spec(w), resident_spec(b)]
        operands += [w, b]

    out_flat, kl_rows = pl.pallas_call(
        vae_kernel,
        grid=(nb,),
        in_specs=in_specs,
        out_specs=(row_spec_D, kl_spec),
        out_shape=(
            jax.ShapeDtypeStruct((B, D), jnp.float32),
            jax.ShapeDtypeStruct((B, 128), jnp.float32),
        ),
        compiler_params=pltpu.CompilerParams(
            dimension_semantics=("parallel",)),
    )(*operands)

    kl = jnp.mean(kl_rows[:, 0])
    return out_flat.reshape(B, C, H, W), kl


def vae_forward_ref(x_nchw, params, z):
    """Pure-JAX reference mirroring the kernel's bf16-weight / f32-accum math."""
    B, C, H, W = x_nchw.shape
    D = C * H * W
    (w1e, b1e, w2e, b2e, wmu, bmu, wvar, bvar,
     w1d, b1d, w2d, b2d, w3d, b3d) = params

    def mm(a, w):
        return jnp.dot(a.astype(jnp.bfloat16), w.astype(jnp.bfloat16),
                       preferred_element_type=jnp.float32)

    x = x_nchw.reshape(B, D).astype(jnp.float32)
    h1 = _silu(mm(x, w1e) + b1e)
    h2 = _silu(mm(h1, w2e) + b2e)
    mu = mm(h2, wmu) + bmu
    log_sigma = mm(h2, wvar) + bvar
    sigma = jnp.exp(log_sigma)
    kl = jnp.mean(jnp.sum(-0.5 * (1.0 + log_sigma - mu * mu - sigma), axis=1))
    rep = mu + sigma * z
    d1 = _silu(mm(rep, w1d) + b1d)
    d2 = _silu(mm(d1, w2d) + b2d)
    out = jnp.tanh(mm(d2, w3d) + b3d)
    return out.reshape(B, C, H, W), kl


if __name__ == "__main__":
    # Small, module-consistent shapes
    B, CH, SHAPE, LATENT = 2, 4, 16, 8
    D_IN = CH * SHAPE * SHAPE  # 1024

    root = jax.random.PRNGKey(0)
    keys = jax.random.split(root, 9)

    # Encoder params
    w1e, b1e = make_linear_params(keys[0], D_IN, 256)
    w2e, b2e = make_linear_params(keys[1], 256, 128)
    wmu, bmu = make_linear_params(keys[2], 128, LATENT)
    wvar, bvar = make_linear_params(keys[3], 128, LATENT)
    # Decoder params
    w1d, b1d = make_linear_params(keys[4], LATENT, 128)
    w2d, b2d = make_linear_params(keys[5], 128, 256)
    w3d, b3d = make_linear_params(keys[6], 256, D_IN)

    params = (w1e, b1e, w2e, b2e, wmu, bmu, wvar, bvar,
              w1d, b1d, w2d, b2d, w3d, b3d)

    # Input (NCHW) and reparametrization noise
    # TODO(synk): torch.randn inside VAE.forward cannot be bit-reproduced; the
    # standard-normal noise is generated here and passed into the kernel.
    x = jax.random.normal(keys[7], (B, CH, SHAPE, SHAPE), jnp.float32)
    z = jax.random.normal(keys[8], (B, LATENT), jnp.float32)

    out, kl = vae_forward(x, params, z)
    out = jax.block_until_ready(out)
    kl = jax.block_until_ready(kl)

    # Correctness check against a precision-matched pure-JAX reference
    out_ref, kl_ref = vae_forward_ref(x, params, z)
    assert out.shape == (B, CH, SHAPE, SHAPE)
    assert jnp.allclose(out, out_ref, atol=5e-3, rtol=5e-3)
    assert jnp.allclose(kl, kl_ref, atol=5e-3, rtol=5e-3)

    print("KERNEL_OK")
</pallas_src>

<mosaic_0001>
module attributes {stable_mosaic.version = 11 : i64} {
  func.func @vae_kernel(%arg0: i32, %arg1: memref<2x1024xf32, #tpu.memory_space<vmem>>, %arg2: memref<2x8xf32, #tpu.memory_space<vmem>>, %arg3: memref<1024x256xbf16, #tpu.memory_space<vmem>>, %arg4: memref<1x256xf32, #tpu.memory_space<vmem>>, %arg5: memref<256x128xbf16, #tpu.memory_space<vmem>>, %arg6: memref<1x128xf32, #tpu.memory_space<vmem>>, %arg7: memref<128x16xbf16, #tpu.memory_space<vmem>>, %arg8: memref<1x16xf32, #tpu.memory_space<vmem>>, %arg9: memref<8x128xbf16, #tpu.memory_space<vmem>>, %arg10: memref<1x128xf32, #tpu.memory_space<vmem>>, %arg11: memref<128x256xbf16, #tpu.memory_space<vmem>>, %arg12: memref<1x256xf32, #tpu.memory_space<vmem>>, %arg13: memref<256x1024xbf16, #tpu.memory_space<vmem>>, %arg14: memref<1x1024xf32, #tpu.memory_space<vmem>>, %arg15: memref<2x1024xf32, #tpu.memory_space<vmem>>, %arg16: memref<2x128xf32, #tpu.memory_space<vmem>>) attributes {dimension_semantics = [#tpu.dimension_semantics<parallel>], iteration_bounds = array<i64: 1>, scalar_prefetch = 0 : i64, scratch_operands = 0 : i64, tpu.core_type = #tpu.core_type<tc>, window_params = [{transform_indices = @transform_0, window_bounds = array<i64: 2, 1024>}, {transform_indices = @transform_1, window_bounds = array<i64: 2, 8>}, {pipeline_mode = #tpu.pipeline_mode<synchronous>, transform_indices = @transform_2, window_bounds = array<i64: 1024, 256>}, {pipeline_mode = #tpu.pipeline_mode<synchronous>, transform_indices = @transform_3, window_bounds = array<i64: 1, 256>}, {pipeline_mode = #tpu.pipeline_mode<synchronous>, transform_indices = @transform_4, window_bounds = array<i64: 256, 128>}, {pipeline_mode = #tpu.pipeline_mode<synchronous>, transform_indices = @transform_5, window_bounds = array<i64: 1, 128>}, {pipeline_mode = #tpu.pipeline_mode<synchronous>, transform_indices = @transform_6, window_bounds = array<i64: 128, 16>}, {pipeline_mode = #tpu.pipeline_mode<synchronous>, transform_indices = @transform_7, window_bounds = array<i64: 1, 16>}, {pipeline_mode = #tpu.pipeline_mode<synchronous>, transform_indices = @transform_8, window_bounds = array<i64: 8, 128>}, {pipeline_mode = #tpu.pipeline_mode<synchronous>, transform_indices = @transform_9, window_bounds = array<i64: 1, 128>}, {pipeline_mode = #tpu.pipeline_mode<synchronous>, transform_indices = @transform_10, window_bounds = array<i64: 128, 256>}, {pipeline_mode = #tpu.pipeline_mode<synchronous>, transform_indices = @transform_11, window_bounds = array<i64: 1, 256>}, {pipeline_mode = #tpu.pipeline_mode<synchronous>, transform_indices = @transform_12, window_bounds = array<i64: 256, 1024>}, {pipeline_mode = #tpu.pipeline_mode<synchronous>, transform_indices = @transform_13, window_bounds = array<i64: 1, 1024>}, {transform_indices = @transform_14, window_bounds = array<i64: 2, 1024>}, {transform_indices = @transform_15, window_bounds = array<i64: 2, 128>}]} {
    %c0 = arith.constant 0 : index
    %c0_0 = arith.constant 0 : index
    %0 = vector.load %arg1[%c0, %c0_0] : memref<2x1024xf32, #tpu.memory_space<vmem>>, vector<2x1024xf32>
    %1 = arith.truncf %0 : vector<2x1024xf32> to vector<2x1024xbf16>
    %c0_1 = arith.constant 0 : index
    %c0_2 = arith.constant 0 : index
    %2 = vector.load %arg3[%c0_1, %c0_2] : memref<1024x256xbf16, #tpu.memory_space<vmem>>, vector<1024x256xbf16>
    %cst = arith.constant dense<0.000000e+00> : vector<2x256xf32>
    %3 = tpu.matmul %1, %2, %cst {dimension_numbers = #tpu.dot_dimension_numbers<[1], [0], [0], [1], [0, 0, 1, 1], [], []>} : vector<2x1024xbf16>, vector<1024x256xbf16>, vector<2x256xf32> -> vector<2x256xf32>
    %c0_3 = arith.constant 0 : index
    %c0_4 = arith.constant 0 : index
    %4 = vector.load %arg4[%c0_3, %c0_4] : memref<1x256xf32, #tpu.memory_space<vmem>>, vector<1x256xf32>
    %5 = vector.broadcast %4 : vector<1x256xf32> to vector<2x256xf32>
    %6 = arith.addf %3, %5 : vector<2x256xf32>
    %7 = arith.negf %6 : vector<2x256xf32>
    %8 = math.exp %7 : vector<2x256xf32>
    %cst_5 = arith.constant 1.000000e+00 : f32
    %9 = vector.broadcast %cst_5 : f32 to vector<2x256xf32>
    %10 = arith.addf %9, %8 : vector<2x256xf32>
    %11 = arith.divf %9, %10 : vector<2x256xf32>
    %12 = arith.mulf %6, %11 : vector<2x256xf32>
    %13 = arith.truncf %12 : vector<2x256xf32> to vector<2x256xbf16>
    %c0_6 = arith.constant 0 : index
    %c0_7 = arith.constant 0 : index
    %14 = vector.load %arg5[%c0_6, %c0_7] : memref<256x128xbf16, #tpu.memory_space<vmem>>, vector<256x128xbf16>
    %cst_8 = arith.constant dense<0.000000e+00> : vector<2x128xf32>
    %15 = tpu.matmul %13, %14, %cst_8 {dimension_numbers = #tpu.dot_dimension_numbers<[1], [0], [0], [1], [0, 0, 1, 1], [], []>} : vector<2x256xbf16>, vector<256x128xbf16>, vector<2x128xf32> -> vector<2x128xf32>
    %c0_9 = arith.constant 0 : index
    %c0_10 = arith.constant 0 : index
    %16 = vector.load %arg6[%c0_9, %c0_10] : memref<1x128xf32, #tpu.memory_space<vmem>>, vector<1x128xf32>
    %17 = vector.broadcast %16 : vector<1x128xf32> to vector<2x128xf32>
    %18 = arith.addf %15, %17 : vector<2x128xf32>
    %19 = arith.negf %18 : vector<2x128xf32>
    %20 = math.exp %19 : vector<2x128xf32>
    %cst_11 = arith.constant 1.000000e+00 : f32
    %21 = vector.broadcast %cst_11 : f32 to vector<2x128xf32>
    %22 = arith.addf %21, %20 : vector<2x128xf32>
    %23 = arith.divf %21, %22 : vector<2x128xf32>
    %24 = arith.mulf %18, %23 : vector<2x128xf32>
    %25 = arith.truncf %24 : vector<2x128xf32> to vector<2x128xbf16>
    %c0_12 = arith.constant 0 : index
    %c0_13 = arith.constant 0 : index
    %26 = vector.load %arg7[%c0_12, %c0_13] : memref<128x16xbf16, #tpu.memory_space<vmem>>, vector<128x16xbf16>
    %cst_14 = arith.constant dense<0.000000e+00> : vector<2x16xf32>
    %27 = tpu.matmul %25, %26, %cst_14 {dimension_numbers = #tpu.dot_dimension_numbers<[1], [0], [0], [1], [0, 0, 1, 1], [], []>} : vector<2x128xbf16>, vector<128x16xbf16>, vector<2x16xf32> -> vector<2x16xf32>
    %c0_15 = arith.constant 0 : index
    %c0_16 = arith.constant 0 : index
    %28 = vector.load %arg8[%c0_15, %c0_16] : memref<1x16xf32, #tpu.memory_space<vmem>>, vector<1x16xf32>
    %29 = vector.broadcast %28 : vector<1x16xf32> to vector<2x16xf32>
    %30 = arith.addf %27, %29 : vector<2x16xf32>
    %31 = vector.extract_strided_slice %30 {offsets = [0, 0], sizes = [2, 8], strides = [1, 1]} : vector<2x16xf32> to vector<2x8xf32>
    %32 = vector.extract_strided_slice %30 {offsets = [0, 8], sizes = [2, 8], strides = [1, 1]} : vector<2x16xf32> to vector<2x8xf32>
    %33 = math.exp %32 : vector<2x8xf32>
    %cst_17 = arith.constant 1.000000e+00 : f32
    %34 = vector.broadcast %cst_17 : f32 to vector<2x8xf32>
    %35 = arith.addf %34, %32 : vector<2x8xf32>
    %36 = arith.mulf %31, %31 : vector<2x8xf32>
    %37 = arith.subf %35, %36 : vector<2x8xf32>
    %38 = arith.subf %37, %33 : vector<2x8xf32>
    %cst_18 = arith.constant -5.000000e-01 : f32
    %39 = vector.broadcast %cst_18 : f32 to vector<2x8xf32>
    %40 = arith.mulf %39, %38 : vector<2x8xf32>
    %cst_19 = arith.constant dense<0.000000e+00> : vector<2xf32>
    %41 = vector.multi_reduction <add>, %40, %cst_19 [1] : vector<2x8xf32> to vector<2xf32>
    %42 = vector.shape_cast %41 : vector<2xf32> to vector<2x1xf32>
    %43 = vector.shape_cast %42 : vector<2x1xf32> to vector<2x1xf32>
    %44 = vector.broadcast %43 : vector<2x1xf32> to vector<2x128xf32>
    %c0_20 = arith.constant 0 : index
    %c0_21 = arith.constant 0 : index
    %45 = vector.load %arg16[%c0_20, %c0_21] : memref<2x128xf32, #tpu.memory_space<vmem>>, vector<2x128xf32>
    tpu.vector_store %arg16[%c0_20, %c0_21], %44 {strides = array<i32>} : memref<2x128xf32, #tpu.memory_space<vmem>>, vector<2x128xf32>,
    %c0_22 = arith.constant 0 : index
    %c0_23 = arith.constant 0 : index
    %46 = vector.load %arg2[%c0_22, %c0_23] : memref<2x8xf32, #tpu.memory_space<vmem>>, vector<2x8xf32>
    %47 = arith.mulf %33, %46 : vector<2x8xf32>
    %48 = arith.addf %31, %47 : vector<2x8xf32>
    %49 = arith.truncf %48 : vector<2x8xf32> to vector<2x8xbf16>
    %c0_24 = arith.constant 0 : index
    %c0_25 = arith.constant 0 : index
    %50 = vector.load %arg9[%c0_24, %c0_25] : memref<8x128xbf16, #tpu.memory_space<vmem>>, vector<8x128xbf16>
    %cst_26 = arith.constant dense<0.000000e+00> : vector<2x128xf32>
    %51 = tpu.matmul %49, %50, %cst_26 {dimension_numbers = #tpu.dot_dimension_numbers<[1], [0], [0], [1], [0, 0, 1, 1], [], []>} : vector<2x8xbf16>, vector<8x128xbf16>, vector<2x128xf32> -> vector<2x128xf32>
    %c0_27 = arith.constant 0 : index
    %c0_28 = arith.constant 0 : index
    %52 = vector.load %arg10[%c0_27, %c0_28] : memref<1x128xf32, #tpu.memory_space<vmem>>, vector<1x128xf32>
    %53 = vector.broadcast %52 : vector<1x128xf32> to vector<2x128xf32>
    %54 = arith.addf %51, %53 : vector<2x128xf32>
    %55 = arith.negf %54 : vector<2x128xf32>
    %56 = math.exp %55 : vector<2x128xf32>
    %cst_29 = arith.constant 1.000000e+00 : f32
    %57 = vector.broadcast %cst_29 : f32 to vector<2x128xf32>
    %58 = arith.addf %57, %56 : vector<2x128xf32>
    %59 = arith.divf %57, %58 : vector<2x128xf32>
    %60 = arith.mulf %54, %59 : vector<2x128xf32>
    %61 = arith.truncf %60 : vector<2x128xf32> to vector<2x128xbf16>
    %c0_30 = arith.constant 0 : index
    %c0_31 = arith.constant 0 : index
    %62 = vector.load %arg11[%c0_30, %c0_31] : memref<128x256xbf16, #tpu.memory_space<vmem>>, vector<128x256xbf16>
    %cst_32 = arith.constant dense<0.000000e+00> : vector<2x256xf32>
    %63 = tpu.matmul %61, %62, %cst_32 {dimension_numbers = #tpu.dot_dimension_numbers<[1], [0], [0], [1], [0, 0, 1, 1], [], []>} : vector<2x128xbf16>, vector<128x256xbf16>, vector<2x256xf32> -> vector<2x256xf32>
    %c0_33 = arith.constant 0 : index
    %c0_34 = arith.constant 0 : index
    %64 = vector.load %arg12[%c0_33, %c0_34] : memref<1x256xf32, #tpu.memory_space<vmem>>, vector<1x256xf32>
    %65 = vector.broadcast %64 : vector<1x256xf32> to vector<2x256xf32>
    %66 = arith.addf %63, %65 : vector<2x256xf32>
    %67 = arith.negf %66 : vector<2x256xf32>
    %68 = math.exp %67 : vector<2x256xf32>
    %cst_35 = arith.constant 1.000000e+00 : f32
    %69 = vector.broadcast %cst_35 : f32 to vector<2x256xf32>
    %70 = arith.addf %69, %68 : vector<2x256xf32>
    %71 = arith.divf %69, %70 : vector<2x256xf32>
    %72 = arith.mulf %66, %71 : vector<2x256xf32>
    %73 = arith.truncf %72 : vector<2x256xf32> to vector<2x256xbf16>
    %c0_36 = arith.constant 0 : index
    %c0_37 = arith.constant 0 : index
    %74 = vector.load %arg13[%c0_36, %c0_37] : memref<256x1024xbf16, #tpu.memory_space<vmem>>, vector<256x1024xbf16>
    %cst_38 = arith.constant dense<0.000000e+00> : vector<2x1024xf32>
    %75 = tpu.matmul %73, %74, %cst_38 {dimension_numbers = #tpu.dot_dimension_numbers<[1], [0], [0], [1], [0, 0, 1, 1], [], []>} : vector<2x256xbf16>, vector<256x1024xbf16>, vector<2x1024xf32> -> vector<2x1024xf32>
    %c0_39 = arith.constant 0 : index
    %c0_40 = arith.constant 0 : index
    %76 = vector.load %arg14[%c0_39, %c0_40] : memref<1x1024xf32, #tpu.memory_space<vmem>>, vector<1x1024xf32>
    %77 = vector.broadcast %76 : vector<1x1024xf32> to vector<2x1024xf32>
    %78 = arith.addf %75, %77 : vector<2x1024xf32>
    %79 = math.tanh %78 : vector<2x1024xf32>
    %c0_41 = arith.constant 0 : index
    %c0_42 = arith.constant 0 : index
    %80 = vector.load %arg15[%c0_41, %c0_42] : memref<2x1024xf32, #tpu.memory_space<vmem>>, vector<2x1024xf32>
    tpu.vector_store %arg15[%c0_41, %c0_42], %79 {strides = array<i32>} : memref<2x1024xf32, #tpu.memory_space<vmem>>, vector<2x1024xf32>,
    return
  }
  func.func @transform_0(%arg0: i32) -> (i32, i32) {
    %c0_i32 = arith.constant 0 : i32
    %c0_i32_0 = arith.constant 0 : i32
    return %arg0, %c0_i32 : i32, i32
  }
  func.func @transform_1(%arg0: i32) -> (i32, i32) {
    %c0_i32 = arith.constant 0 : i32
    %c0_i32_0 = arith.constant 0 : i32
    return %arg0, %c0_i32 : i32, i32
  }
  func.func @transform_2(%arg0: i32) -> (i32, i32) {
    %c0_i32 = arith.constant 0 : i32
    %c0_i32_0 = arith.constant 0 : i32
    %c0_i32_1 = arith.constant 0 : i32
    return %c0_i32, %c0_i32_0 : i32, i32
  }
  func.func @transform_3(%arg0: i32) -> (i32, i32) {
    %c0_i32 = arith.constant 0 : i32
    %c0_i32_0 = arith.constant 0 : i32
    %c0_i32_1 = arith.constant 0 : i32
    return %c0_i32, %c0_i32_0 : i32, i32
  }
  func.func @transform_4(%arg0: i32) -> (i32, i32) {
    %c0_i32 = arith.constant 0 : i32
    %c0_i32_0 = arith.constant 0 : i32
    %c0_i32_1 = arith.constant 0 : i32
    return %c0_i32, %c0_i32_0 : i32, i32
  }
  func.func @transform_5(%arg0: i32) -> (i32, i32) {
    %c0_i32 = arith.constant 0 : i32
    %c0_i32_0 = arith.constant 0 : i32
    %c0_i32_1 = arith.constant 0 : i32
    return %c0_i32, %c0_i32_0 : i32, i32
  }
  func.func @transform_6(%arg0: i32) -> (i32, i32) {
    %c0_i32 = arith.constant 0 : i32
    %c0_i32_0 = arith.constant 0 : i32
    %c0_i32_1 = arith.constant 0 : i32
    return %c0_i32, %c0_i32_0 : i32, i32
  }
  func.func @transform_7(%arg0: i32) -> (i32, i32) {
    %c0_i32 = arith.constant 0 : i32
    %c0_i32_0 = arith.constant 0 : i32
    %c0_i32_1 = arith.constant 0 : i32
    return %c0_i32, %c0_i32_0 : i32, i32
  }
  func.func @transform_8(%arg0: i32) -> (i32, i32) {
    %c0_i32 = arith.constant 0 : i32
    %c0_i32_0 = arith.constant 0 : i32
    %c0_i32_1 = arith.constant 0 : i32
    return %c0_i32, %c0_i32_0 : i32, i32
  }
  func.func @transform_9(%arg0: i32) -> (i32, i32) {
    %c0_i32 = arith.constant 0 : i32
    %c0_i32_0 = arith.constant 0 : i32
    %c0_i32_1 = arith.constant 0 : i32
    return %c0_i32, %c0_i32_0 : i32, i32
  }
  func.func @transform_10(%arg0: i32) -> (i32, i32) {
    %c0_i32 = arith.constant 0 : i32
    %c0_i32_0 = arith.constant 0 : i32
    %c0_i32_1 = arith.constant 0 : i32
    return %c0_i32, %c0_i32_0 : i32, i32
  }
  func.func @transform_11(%arg0: i32) -> (i32, i32) {
    %c0_i32 = arith.constant 0 : i32
    %c0_i32_0 = arith.constant 0 : i32
    %c0_i32_1 = arith.constant 0 : i32
    return %c0_i32, %c0_i32_0 : i32, i32
  }
  func.func @transform_12(%arg0: i32) -> (i32, i32) {
    %c0_i32 = arith.constant 0 : i32
    %c0_i32_0 = arith.constant 0 : i32
    %c0_i32_1 = arith.constant 0 : i32
    return %c0_i32, %c0_i32_0 : i32, i32
  }
  func.func @transform_13(%arg0: i32) -> (i32, i32) {
    %c0_i32 = arith.constant 0 : i32
    %c0_i32_0 = arith.constant 0 : i32
    %c0_i32_1 = arith.constant 0 : i32
    return %c0_i32, %c0_i32_0 : i32, i32
  }
  func.func @transform_14(%arg0: i32) -> (i32, i32) {
    %c0_i32 = arith.constant 0 : i32
    %c0_i32_0 = arith.constant 0 : i32
    return %arg0, %c0_i32 : i32, i32
  }
  func.func @transform_15(%arg0: i32) -> (i32, i32) {
    %c0_i32 = arith.constant 0 : i32
    %c0_i32_0 = arith.constant 0 : i32
    return %arg0, %c0_i32 : i32, i32
  }
}

</mosaic_0001>

<bundles_post_ra>
// kernel: tpu_custom_call.1
= control target key start
LH: loop header
LB: loop body
LE: loop exit
PB: predicated region body
PF: predicated region fallthrough
CT: control target
= control target key end

     0   :  { %21 = vsyncpa [#allocation3], 0  ;;  %s4687_s0 = inlined_call_operand.vmem [shape: f32[2,1024], index: 0, kind: input, shape index: {}]   ;;  %s4688_s1 = inlined_call_operand.vmem [shape: f32[2,8], index: 1, kind: input, shape index: {}]   ;;  %s4689_s2 = inlined_call_operand.hbm [shape: bf16[1024,256], index: 2, kind: input, shape index: {}]   ;;  %s4690_s3 = inlined_call_operand.vmem [shape: f32[1,256], index: 3, kind: input, shape index: {}]   ;;  %s4691_s4 = inlined_call_operand.hbm [shape: bf16[256,128], index: 4, kind: input, shape index: {}]   ;;  %s4692_s5 = inlined_call_operand.vmem [shape: f32[1,128], index: 5, kind: input, shape index: {}]   ;;  %s4693_s6 = inlined_call_operand.vmem [shape: bf16[128,16], index: 6, kind: input, shape index: {}]   ;;  %s4694_s7 = inlined_call_operand.vmem [shape: f32[1,16], index: 7, kind: input, shape index: {}]   ;;  %s4695_s8 = inlined_call_operand.vmem [shape: bf16[8,128], index: 8, kind: input, shape index: {}]   ;;  %s4696_s9 = inlined_call_operand.vmem [shape: f32[1,128], index: 9, kind: input, shape index: {}]   ;;  %s4697_s10 = inlined_call_operand.hbm [shape: bf16[128,256], index: 10, kind: input, shape index: {}]   ;;  %s4698_s11 = inlined_call_operand.vmem [shape: f32[1,256], index: 11, kind: input, shape index: {}]   ;;  %s4699_s12 = inlined_call_operand.hbm [shape: bf16[256,1024], index: 12, kind: input, shape index: {}]   ;;  %s4700_s13 = inlined_call_operand.vmem [shape: f32[1,1024], index: 13, kind: input, shape index: {}]   ;;  %s4701_s14 = inlined_call_operand.hbm [shape: f32[2,1024], index: 14, kind: output, shape index: {0}]   ;;  %s4702_s15 = inlined_call_operand.hbm [shape: f32[2,128], index: 15, kind: output, shape index: {1}]  }
   0x1   :  { %22 = vsyncpa [#allocation6], 0 }
   0x2   :  { %23 = vsyncpa [#allocation9], 0 }
   0x3   :  { %24 = vsyncpa [#allocation4], 0  ;;  %s49_s20 = sshll.u32 %s4691_s4, 4  ;;  %s50_s20 = int_to_ptr.hbm [resolvable:$true] %s49_s20 }
   0x4   :  { %25 = vsyncpa [#allocation12], 0  ;;  %s4441_s21 = smov [#allocation5]   ;;  %s34_s25 = sshll.u32 %s4689_s2, 4  ;;  %s35_s25 = int_to_ptr.hbm [resolvable:$true] %s34_s25 }
   0x5   :  { %s51_s22 = sshll.u32 %s4441_s21, 4  ;;  %s4442_s26 = smov 64   ;;  %s52_s22 = int_to_ptr.vmem [resolvable:$true] %s51_s22 }
   0x6   :  { %s4443_s27 = smov 4   ;;  %s4444_s28 = smov [#allocation2]  }
   0x7   :  { %57 = dma.hbm_to_vmem [thread:$0]  %s50_s20, 2048, %s52_s22, [#allocation6], %s4442_s26, %s4442_s26, %s4443_s27  }
   0x8   :  { %s36_s29 = sshll.u32 %s4444_s28, 4  ;;  %s4445_s30 = smov 128   ;;  %s37_s29 = int_to_ptr.vmem [resolvable:$true] %s36_s29 }
   0x9   :  { %s4446_s16 = smov 8   ;;  %s72_s18 = sshll.u32 %s4697_s10, 4  ;;  %s73_s18 = int_to_ptr.hbm [resolvable:$true] %s72_s18 }
   0xa   :  { %42 = dma.hbm_to_vmem [thread:$0]  %s35_s25, 16384, %s37_s29, [#allocation3], %s4445_s30, %s4445_s30, %s4446_s16  }
   0xb   :  { %s4447_s19 = smov [#allocation7]   ;;  %s87_s20 = sshll.u32 %s4699_s12, 4  ;;  %s88_s20 = int_to_ptr.hbm [resolvable:$true] %s87_s20 }
   0xc   :  { %s74_s21 = sshll.u32 %s4447_s19, 4  ;;  %s4448_s22 = smov [#allocation8]   ;;  %s75_s21 = int_to_ptr.vmem [resolvable:$true] %s74_s21 }
   0xd   :  { %80 = dma.hbm_to_vmem [thread:$0]  %s73_s18, 2048, %s75_s21, [#allocation6], %s4445_s30, %s4445_s30, %s4446_s16  }
   0xe   :  { %s89_s24 = sshll.u32 %s4448_s22, 4  ;;  %s4449_s26 = smov 512   ;;  %s90_s24 = int_to_ptr.vmem [resolvable:$true] %s89_s24 }
   0xf   :  { %s4450_s25 = smov 32  }
  0x10   :  { %95 = dma.hbm_to_vmem [thread:$0]  %s88_s20, 16384, %s90_s24, [#allocation9], %s4449_s26, %s4449_s26, %s4450_s25  }
  0x11   :  { %4431 = dma.done.wait [#allocation3], 16384  }
  0x12   :  { %4432 = vsyncadd [#allocation3], 4294950912 }
  0x13   :  { %4433 = dma.done.wait [#allocation6], 4096  }
  0x14   :  { %4434 = vsyncadd [#allocation6], 4294963200 }
  0x15   :  { %4435 = dma.done.wait [#allocation9], 16384  }
  0x16   :  { %4436 = vsyncadd [#allocation9], 4294950912  ;;  %v2800_v0 = vld [vmem:[#allocation2 + $0x70] sm:$0xf]  ;;  %v3948_v1 = vld [vmem:[#allocation2 + $0x74] sm:$0xf0] }
  0x17   :  { %v2864_v2 = vld [vmem:[#allocation2 + $0xf0] sm:$0xf]  ;;  %v2801_v3 = vor.u32 %v3948_v1, %v2800_v0  ;;  %v3964_v4 = vld [vmem:[#allocation2 + $0xf4] sm:$0xf0]  ;;  %v2792_v11 = vld [vmem:[#allocation2 + $0x60] sm:$0xf] }
  0x18   :  { %v2928_v5 = vld [vmem:[#allocation2 + $0x170] sm:$0xf]  ;;  %v3980_v6 = vld [vmem:[#allocation2 + $0x174] sm:$0xf0]  ;;  %v2865_v7 = vor.u32 %v3964_v4, %v2864_v2  ;;  %v3946_v13 = vld [vmem:[#allocation2 + $0x64] sm:$0xf0] }
  0x19   :  { %v2929_v8 = vor.u32 %v3980_v6, %v2928_v5  ;;  %v2992_v9 = vld [vmem:[#allocation2 + $0x1f0] sm:$0xf]  ;;  %v3996_v10 = vld [vmem:[#allocation2 + $0x1f4] sm:$0xf0]  ;;  %920 = vmatpush.bf16.msra.mxu0 %v2801_v3  ;;  %v2856_v14 = vld [vmem:[#allocation2 + $0xe0] sm:$0xf]  ;;  %v2793_v16 = vor.u32 %v3946_v13, %v2792_v11 }
  0x1a   :  { %v2993_v12 = vor.u32 %v3996_v10, %v2992_v9  ;;  %v3962_v15 = vld [vmem:[#allocation2 + $0xe4] sm:$0xf0]  ;;  %933 = vmatpush.bf16.msra.mxu1 %v2865_v7  ;;  %v2920_v18 = vld [vmem:[#allocation2 + $0x160] sm:$0xf]  ;;  %v2784_v23 = vld [vmem:[#allocation2 + $0x50] sm:$0xf] }
  0x1b   :  { %946 = vmatpush.bf16.msra.mxu2 %v2929_v8  ;;  %v2857_v17 = vor.u32 %v3962_v15, %v2856_v14  ;;  %v3978_v19 = vld [vmem:[#allocation2 + $0x164] sm:$0xf0]  ;;  %v2984_v20 = vld [vmem:[#allocation2 + $0x1e0] sm:$0xf]  ;;  %v3944_v24 = vld [vmem:[#allocation2 + $0x54] sm:$0xf0] }
  0x1c   :  { %959 = vmatpush.bf16.msra.mxu3 %v2993_v12  ;;  %v2921_v21 = vor.u32 %v3978_v19, %v2920_v18  ;;  %v3994_v22 = vld [vmem:[#allocation2 + $0x1e4] sm:$0xf0]  ;;  %v2848_v26 = vld [vmem:[#allocation2 + $0xd0] sm:$0xf]  ;;  %v3960_v27 = vld [vmem:[#allocation2 + $0xd4] sm:$0xf0]  ;;  %v2785_v29 = vor.u32 %v3944_v24, %v2784_v23 }
  0x1d   :  { %v2985_v25 = vor.u32 %v3994_v22, %v2984_v20  ;;  %v2912_v28 = vld [vmem:[#allocation2 + $0x150] sm:$0xf]  ;;  %921 = vmatpush.bf16.msra.mxu0 %v2793_v16  ;;  %v3976_v30 = vld [vmem:[#allocation2 + $0x154] sm:$0xf0]  ;;  %v2849_v33 = vor.u32 %v3960_v27, %v2848_v26  ;;  %v2776_v35 = vld [vmem:[#allocation2 + $0x40] sm:$0xf] }
  0x1e   :  { %v2976_v31 = vld [vmem:[#allocation2 + $0x1d0] sm:$0xf]  ;;  %v3992_v32 = vld [vmem:[#allocation2 + $0x1d4] sm:$0xf0]  ;;  %934 = vmatpush.bf16.msra.mxu1 %v2857_v17  ;;  %v2913_v34 = vor.u32 %v3976_v30, %v2912_v28  ;;  %v3942_v36 = vld [vmem:[#allocation2 + $0x44] sm:$0xf0] }
  0x1f   :  { %947 = vmatpush.bf16.msra.mxu2 %v2921_v21  ;;  %v2840_v37 = vld [vmem:[#allocation2 + $0xc0] sm:$0xf]  ;;  %v2977_v38 = vor.u32 %v3992_v32, %v2976_v31  ;;  %v3958_v39 = vld [vmem:[#allocation2 + $0xc4] sm:$0xf0]  ;;  %v2777_v44 = vor.u32 %v3942_v36, %v2776_v35  ;;  %v2768_v47 = vld [vmem:[#allocation2 + $0x30] sm:$0xf] }
  0x20   :  { %960 = vmatpush.bf16.msra.mxu3 %v2985_v25  ;;  %v2904_v40 = vld [vmem:[#allocation2 + $0x140] sm:$0xf]  ;;  %v3974_v41 = vld [vmem:[#allocation2 + $0x144] sm:$0xf0]  ;;  %v2841_v45 = vor.u32 %v3958_v39, %v2840_v37  ;;  %v3940_v48 = vld [vmem:[#allocation2 + $0x34] sm:$0xf0] }
  0x21   :  { %v2968_v42 = vld [vmem:[#allocation2 + $0x1c0] sm:$0xf]  ;;  %v3990_v43 = vld [vmem:[#allocation2 + $0x1c4] sm:$0xf0]  ;;  %922 = vmatpush.bf16.msra.mxu0 %v2785_v29  ;;  %v2905_v46 = vor.u32 %v3974_v41, %v2904_v40  ;;  %v2832_v49 = vld [vmem:[#allocation2 + $0xb0] sm:$0xf]  ;;  %v2769_v56 = vor.u32 %v3940_v48, %v2768_v47 }
  0x22   :  { %935 = vmatpush.bf16.msra.mxu1 %v2849_v33  ;;  %v2969_v50 = vor.u32 %v3990_v43, %v2968_v42  ;;  %v3956_v51 = vld [vmem:[#allocation2 + $0xb4] sm:$0xf0]  ;;  %v2896_v52 = vld [vmem:[#allocation2 + $0x130] sm:$0xf]  ;;  %v2760_v59 = vld [vmem:[#allocation2 + $0x20] sm:$0xf] }
  0x23   :  { %948 = vmatpush.bf16.msra.mxu2 %v2913_v34  ;;  %v3972_v53 = vld [vmem:[#allocation2 + $0x134] sm:$0xf0]  ;;  %v2960_v54 = vld [vmem:[#allocation2 + $0x1b0] sm:$0xf]  ;;  %v2833_v57 = vor.u32 %v3956_v51, %v2832_v49  ;;  %v3938_v60 = vld [vmem:[#allocation2 + $0x24] sm:$0xf0] }
  0x24   :  { %961 = vmatpush.bf16.msra.mxu3 %v2977_v38  ;;  %v3988_v55 = vld [vmem:[#allocation2 + $0x1b4] sm:$0xf0]  ;;  %v2897_v58 = vor.u32 %v3972_v53, %v2896_v52  ;;  %v2824_v61 = vld [vmem:[#allocation2 + $0xa0] sm:$0xf]  ;;  %v3954_v63 = vld [vmem:[#allocation2 + $0xa4] sm:$0xf0]  ;;  %v2761_v4 = vor.u32 %v3938_v60, %v2760_v59 }
  0x25   :  { %923 = vmatpush.bf16.msra.mxu0 %v2777_v44  ;;  %v2961_v62 = vor.u32 %v3988_v55, %v2960_v54  ;;  %v2888_v0 = vld [vmem:[#allocation2 + $0x120] sm:$0xf]  ;;  %v3970_v1 = vld [vmem:[#allocation2 + $0x124] sm:$0xf0]  ;;  %v2825_v5 = vor.u32 %v3954_v63, %v2824_v61  ;;  %v2752_v7 = vld [vmem:[#allocation2 + $0x10] sm:$0xf] }
  0x26   :  { %936 = vmatpush.bf16.msra.mxu1 %v2841_v45  ;;  %v2952_v2 = vld [vmem:[#allocation2 + $0x1a0] sm:$0xf]  ;;  %v3986_v3 = vld [vmem:[#allocation2 + $0x1a4] sm:$0xf0]  ;;  %v2889_v6 = vor.u32 %v3970_v1, %v2888_v0  ;;  %v3936_v8 = vld [vmem:[#allocation2 + $0x14] sm:$0xf0] }
  0x27   :  { %949 = vmatpush.bf16.msra.mxu2 %v2905_v46  ;;  %v2816_v9 = vld [vmem:[#allocation2 + $0x90] sm:$0xf]  ;;  %v2953_v10 = vor.u32 %v3986_v3, %v2952_v2  ;;  %v3952_v11 = vld [vmem:[#allocation2 + $0x94] sm:$0xf0]  ;;  %v2753_v16 = vor.u32 %v3936_v8, %v2752_v7  ;;  %v2744_v17 = vld [vmem:[#allocation2] sm:$0xf] }
  0x28   :  { %962 = vmatpush.bf16.msra.mxu3 %v2969_v50  ;;  %v2880_v12 = vld [vmem:[#allocation2 + $0x110] sm:$0xf]  ;;  %v3968_v13 = vld [vmem:[#allocation2 + $0x114] sm:$0xf0]  ;;  %v3934_v18 = vld [vmem:[#allocation2 + $0x4] sm:$0xf0]  ;;  %v2817_v19 = vor.u32 %v3952_v11, %v2816_v9 }
  0x29   :  { %924 = vmatpush.bf16.msra.mxu0 %v2769_v56  ;;  %v2944_v14 = vld [vmem:[#allocation2 + $0x190] sm:$0xf]  ;;  %v3984_v15 = vld [vmem:[#allocation2 + $0x194] sm:$0xf0]  ;;  %v2881_v20 = vor.u32 %v3968_v13, %v2880_v12  ;;  %v2808_v21 = vld [vmem:[#allocation2 + $0x80] sm:$0xf]  ;;  %v2745_v31 = vor.u32 %v3934_v18, %v2744_v17 }
  0x2a   :  { %937 = vmatpush.bf16.msra.mxu1 %v2833_v57  ;;  %v3950_v22 = vld [vmem:[#allocation2 + $0x84] sm:$0xf0]  ;;  %v2872_v23 = vld [vmem:[#allocation2 + $0x100] sm:$0xf]  ;;  %v2945_v24 = vor.u32 %v3984_v15, %v2944_v14  ;;  %v3056_v28 = vld [vmem:[#allocation2 + $0x270] sm:$0xf] }
  0x2b   :  { %950 = vmatpush.bf16.msra.mxu2 %v2897_v58  ;;  %v3966_v25 = vld [vmem:[#allocation2 + $0x104] sm:$0xf0]  ;;  %v2936_v26 = vld [vmem:[#allocation2 + $0x180] sm:$0xf]  ;;  %v4012_v29 = vld [vmem:[#allocation2 + $0x274] sm:$0xf0]  ;;  %v2809_v35 = vor.u32 %v3950_v22, %v2808_v21 }
  0x2c   :  { %963 = vmatpush.bf16.msra.mxu3 %v2961_v62  ;;  %v3982_v27 = vld [vmem:[#allocation2 + $0x184] sm:$0xf0]  ;;  %v3120_v30 = vld [vmem:[#allocation2 + $0x2f0] sm:$0xf]  ;;  %v4028_v32 = vld [vmem:[#allocation2 + $0x2f4] sm:$0xf0]  ;;  %v2873_v36 = vor.u32 %v3966_v25, %v2872_v23  ;;  %v3057_v40 = vor.u32 %v4012_v29, %v3056_v28 }
  0x2d   :  { %925 = vmatpush.bf16.msra.mxu0 %v2761_v4  ;;  %v3184_v33 = vld [vmem:[#allocation2 + $0x370] sm:$0xf]  ;;  %v4044_v34 = vld [vmem:[#allocation2 + $0x374] sm:$0xf0]  ;;  %v2937_v39 = vor.u32 %v3982_v27, %v2936_v26  ;;  %v3121_v41 = vor.u32 %v4028_v32, %v3120_v30  ;;  %v3048_v43 = vld [vmem:[#allocation2 + $0x260] sm:$0xf] }
  0x2e   :  { %938 = vmatpush.bf16.msra.mxu1 %v2825_v5  ;;  %v3248_v37 = vld [vmem:[#allocation2 + $0x3f0] sm:$0xf]  ;;  %v4060_v38 = vld [vmem:[#allocation2 + $0x3f4] sm:$0xf0]  ;;  %v3185_v42 = vor.u32 %v4044_v34, %v3184_v33  ;;  %v4010_v44 = vld [vmem:[#allocation2 + $0x264] sm:$0xf0] }
  0x2f   :  { %951 = vmatpush.bf16.msra.mxu2 %v2889_v6  ;;  %v3112_v45 = vld [vmem:[#allocation2 + $0x2e0] sm:$0xf]  ;;  %v3249_v46 = vor.u32 %v4060_v38, %v3248_v37  ;;  %v4026_v47 = vld [vmem:[#allocation2 + $0x2e4] sm:$0xf0]  ;;  %v115_v52 = vld [vmem:[%s4687_s0] sm:$0xff]  ;;  %v3049_v53 = vor.u32 %v4010_v44, %v3048_v43  ;;  %vm1471_vm12 = vcmask 1043456  }
  0x30   :  { %964 = vmatpush.bf16.msra.mxu3 %v2953_v10  ;;  %v3176_v48 = vld [vmem:[#allocation2 + $0x360] sm:$0xf]  ;;  %v4042_v49 = vld [vmem:[#allocation2 + $0x364] sm:$0xf0]  ;;  %119 = vst [vmem:[#allocation1] ss:$4 sm:$0xff] %v115_v52  ;;  %v3113_v54 = vor.u32 %v4026_v47, %v3112_v45 }
  0x31   :  { %926 = vmatpush.bf16.msra.mxu0 %v2753_v16  ;;  %v3240_v50 = vld [vmem:[#allocation2 + $0x3e0] sm:$0xf]  ;;  %v4058_v51 = vld [vmem:[#allocation2 + $0x3e4] sm:$0xf0]  ;;  %v3177_v55 = vor.u32 %v4042_v49, %v3176_v48  ;;  %v3040_v56 = vld [vmem:[#allocation2 + $0x250] sm:$0xf] }
  0x32   :  { %939 = vmatpush.bf16.msra.mxu1 %v2817_v19  ;;  %v4008_v57 = vld [vmem:[#allocation2 + $0x254] sm:$0xf0]  ;;  %v3104_v58 = vld [vmem:[#allocation2 + $0x2d0] sm:$0xf]  ;;  %v3241_v59 = vor.u32 %v4058_v51, %v3240_v50  ;;  %v3032_v2 = vld [vmem:[#allocation2 + $0x240] sm:$0xf] }
  0x33   :  { %952 = vmatpush.bf16.msra.mxu2 %v2881_v20  ;;  %v4024_v60 = vld [vmem:[#allocation2 + $0x2d4] sm:$0xf0]  ;;  %v3168_v61 = vld [vmem:[#allocation2 + $0x350] sm:$0xf]  ;;  %v3041_v1 = vor.u32 %v4008_v57, %v3040_v56  ;;  %v4006_v3 = vld [vmem:[#allocation2 + $0x244] sm:$0xf0] }
  0x34   :  { %965 = vmatpush.bf16.msra.mxu3 %v2945_v24  ;;  %v4040_v62 = vld [vmem:[#allocation2 + $0x354] sm:$0xf0]  ;;  %v3232_v63 = vld [vmem:[#allocation2 + $0x3d0] sm:$0xf]  ;;  %v3105_v4 = vor.u32 %v4024_v60, %v3104_v58  ;;  %v3096_v6 = vld [vmem:[#allocation2 + $0x2c0] sm:$0xf]  ;;  %v3033_v15 = vor.u32 %v4006_v3, %v3032_v2 }
  0x35   :  { %927 = vmatpush.bf16.msra.mxu0 %v2745_v31  ;;  %v4056_v0 = vld [vmem:[#allocation2 + $0x3d4] sm:$0xf0]  ;;  %v3169_v5 = vor.u32 %v4040_v62, %v3168_v61  ;;  %v4022_v7 = vld [vmem:[#allocation2 + $0x2c4] sm:$0xf0]  ;;  %v3160_v8 = vld [vmem:[#allocation2 + $0x340] sm:$0xf] }
  0x36   :  { %940 = vmatpush.bf16.msra.mxu1 %v2809_v35  ;;  %v3233_v9 = vor.u32 %v4056_v0, %v3232_v63  ;;  %v4038_v10 = vld [vmem:[#allocation2 + $0x344] sm:$0xf0]  ;;  %v3224_v11 = vld [vmem:[#allocation2 + $0x3c0] sm:$0xf]  ;;  %v3097_v16 = vor.u32 %v4022_v7, %v3096_v6  ;;  %v3024_v22 = vld [vmem:[#allocation2 + $0x230] sm:$0xf] }
  0x37   :  { %953 = vmatpush.bf16.msra.mxu2 %v2873_v36  ;;  %v4054_v12 = vld [vmem:[#allocation2 + $0x3c4] sm:$0xf0]  ;;  %v122_v14 = vld.sshfl [vmem:[#allocation1] sm:$0xff pattern:$0x73625140]  ;;  %v3161_v21 = vor.u32 %v4038_v10, %v3160_v8  ;;  %v116_v45 = vld [vmem:[%s4687_s0 + $0x8] sm:$0xff] }
  0x38   :  { %966 = vmatpush.bf16.msra.mxu3 %v2937_v39  ;;  %v124_v13 = vld.sshfl [vmem:[#allocation1 + $0x10] sm:$0xff pattern:$0x73625140]  ;;  %v4553_v18 = vpack.c.bf16 %v122_v14, %v122_v14  ;;  %v125_v19 = vld.sshfl [vmem:[#allocation1 + $0x18] sm:$0xff pattern:$0x73625140]  ;;  %v3225_v27 = vor.u32 %v4054_v12, %v3224_v11 }
  0x39   :  { %972 = vmatpush.bf16.msrb.mxu0 %v3057_v40  ;;  %v4551_v17 = vpack.c.bf16 %v124_v13, %v124_v13  ;;  %v123_v20 = vld.sshfl [vmem:[#allocation1 + $0x8] sm:$0xff pattern:$0x73625140]  ;;  %v4004_v23 = vld [vmem:[#allocation2 + $0x234] sm:$0xf0]  ;;  %v4555_v25 = vpack.c.bf16 %v125_v19, %v125_v19  ;;  %vm1467_vm13 = vcmask 64512  }
  0x3a   :  { %985 = vmatpush.bf16.msrb.mxu1 %v3121_v41  ;;  %v3088_v24 = vld [vmem:[#allocation2 + $0x2b0] sm:$0xf]  ;;  %v4557_v26 = vpack.c.bf16 %v123_v20, %v123_v20  ;;  %v4020_v28 = vld [vmem:[#allocation2 + $0x2b4] sm:$0xf0]  ;;  %928 = vmatmul.bf16.vlgmr.msra.gmra.mxu0 %v4553_v18  ;;  %v3025_v33 = vor.u32 %v4004_v23, %v3024_v22  ;;  %v3016_v36 = vld [vmem:[#allocation2 + $0x220] sm:$0xf] }
  0x3b   :  { %998 = vmatpush.bf16.msrb.mxu2 %v3185_v42  ;;  %v3152_v29 = vld [vmem:[#allocation2 + $0x330] sm:$0xf]  ;;  %v4036_v30 = vld [vmem:[#allocation2 + $0x334] sm:$0xf0]  ;;  %967 = vmatmul.bf16.vlgmr.msra.gmra.mxu3 %v4555_v25  ;;  %v3089_v34 = vor.u32 %v4020_v28, %v3088_v24  ;;  %v4002_v37 = vld [vmem:[#allocation2 + $0x224] sm:$0xf0] }
  0x3c   :  { %1011 = vmatpush.bf16.msrb.mxu3 %v3249_v46  ;;  %954 = vmatmul.bf16.vlgmr.msra.gmra.mxu2 %v4551_v17  ;;  %v3216_v31 = vld [vmem:[#allocation2 + $0x3b0] sm:$0xf]  ;;  %v4052_v32 = vld [vmem:[#allocation2 + $0x3b4] sm:$0xf0]  ;;  %v3153_v35 = vor.u32 %v4036_v30, %v3152_v29  ;;  %v3080_v38 = vld [vmem:[#allocation2 + $0x2a0] sm:$0xf]  ;;  %v3017_v46 = vor.u32 %v4002_v37, %v3016_v36 }
  0x3d   :  { %973 = vmatpush.bf16.msrb.mxu0 %v3049_v53  ;;  %941 = vmatmul.bf16.vlgmr.msra.gmra.mxu1 %v4557_v26  ;;  %v3217_v39 = vor.u32 %v4052_v32, %v3216_v31  ;;  %v4018_v40 = vld [vmem:[#allocation2 + $0x2a4] sm:$0xf0]  ;;  %v3144_v41 = vld [vmem:[#allocation2 + $0x320] sm:$0xf]  ;;  %121 = vst [vmem:[#allocation1 + $0x20] ss:$4 sm:$0xff] %v116_v45 }
  0x3e   :  { %986 = vmatpush.bf16.msrb.mxu1 %v3113_v54  ;;  %v4034_v42 = vld [vmem:[#allocation2 + $0x324] sm:$0xf0]  ;;  %v3208_v43 = vld [vmem:[#allocation2 + $0x3a0] sm:$0xf]  ;;  %v3081_v47 = vor.u32 %v4018_v40, %v3080_v38  ;;  %v3008_v49 = vld [vmem:[#allocation2 + $0x210] sm:$0xf] }
  0x3f   :  { %999 = vmatpush.bf16.msrb.mxu2 %v3177_v55  ;;  %v4050_v44 = vld [vmem:[#allocation2 + $0x3a4] sm:$0xf0]  ;;  %v3145_v48 = vor.u32 %v4034_v42, %v3144_v41  ;;  %v4000_v50 = vld [vmem:[#allocation2 + $0x214] sm:$0xf0]  ;;  %v3072_v51 = vld [vmem:[#allocation2 + $0x290] sm:$0xf] }
  0x40   :  { %1012 = vmatpush.bf16.msrb.mxu3 %v3241_v59  ;;  %v3209_v52 = vor.u32 %v4050_v44, %v3208_v43  ;;  %v4016_v53 = vld [vmem:[#allocation2 + $0x294] sm:$0xf0]  ;;  %v3136_v54 = vld [vmem:[#allocation2 + $0x310] sm:$0xf]  ;;  %v3000_v58 = vld [vmem:[#allocation2 + $0x200] sm:$0xf]  ;;  %v3009_v59 = vor.u32 %v4000_v50, %v3008_v49 }
  0x41   :  { %974 = vmatpush.bf16.msrb.mxu0 %v3041_v1  ;;  %v4032_v55 = vld [vmem:[#allocation2 + $0x314] sm:$0xf0]  ;;  %v3200_v56 = vld [vmem:[#allocation2 + $0x390] sm:$0xf]  ;;  %v3998_v60 = vld [vmem:[#allocation2 + $0x204] sm:$0xf0]  ;;  %v3073_v63 = vor.u32 %v4016_v53, %v3072_v51 }
  0x42   :  { %987 = vmatpush.bf16.msrb.mxu1 %v3105_v4  ;;  %v4048_v57 = vld [vmem:[#allocation2 + $0x394] sm:$0xf0]  ;;  %v3064_v61 = vld [vmem:[#allocation2 + $0x280] sm:$0xf]  ;;  %v4014_v62 = vld [vmem:[#allocation2 + $0x284] sm:$0xf0]  ;;  %v3137_v0 = vor.u32 %v4032_v55, %v3136_v54  ;;  %v3001_v11 = vor.u32 %v3998_v60, %v3000_v58 }
  0x43   :  { %1000 = vmatpush.bf16.msrb.mxu2 %v3169_v5  ;;  %v3128_v1 = vld [vmem:[#allocation2 + $0x300] sm:$0xf]  ;;  %v4030_v2 = vld [vmem:[#allocation2 + $0x304] sm:$0xf0]  ;;  %v3201_v4 = vor.u32 %v4048_v57, %v3200_v56  ;;  %v3947_v6 = vld [vmem:[#allocation2 + $0x74] sm:$0xf] }
  0x44   :  { %1013 = vmatpush.bf16.msrb.mxu3 %v3233_v9  ;;  %v3192_v3 = vld [vmem:[#allocation2 + $0x380] sm:$0xf]  ;;  %v4046_v5 = vld [vmem:[#allocation2 + $0x384] sm:$0xf0]  ;;  %v2802_v7 = vld [vmem:[#allocation2 + $0x78] sm:$0xf0] }
  0x45   :  { %975 = vmatpush.bf16.msrb.mxu0 %v3033_v15  ;;  %v3963_v8 = vld [vmem:[#allocation2 + $0xf4] sm:$0xf]  ;;  %v2866_v9 = vld [vmem:[#allocation2 + $0xf8] sm:$0xf0]  ;;  %v3065_v15 = vor.u32 %v4014_v62, %v3064_v61  ;;  %v3945_v20 = vld [vmem:[#allocation2 + $0x64] sm:$0xf]  ;;  %v3193_v22 = vor.u32 %v4046_v5, %v3192_v3  ;;  %v2805_v23 = vor.u32 %v3947_v6, %v2802_v7 }
  0x46   :  { %988 = vmatpush.bf16.msrb.mxu1 %v3097_v16  ;;  %v3979_v10 = vld [vmem:[#allocation2 + $0x174] sm:$0xf]  ;;  %v2930_v12 = vld [vmem:[#allocation2 + $0x178] sm:$0xf0]  ;;  %v3129_v16 = vor.u32 %v4030_v2, %v3128_v1  ;;  %v2869_v28 = vor.u32 %v3963_v8, %v2866_v9  ;;  %v3961_v30 = vld [vmem:[#allocation2 + $0xe4] sm:$0xf] }
  0x47   :  { %1001 = vmatpush.bf16.msrb.mxu2 %v3161_v21  ;;  %v3995_v13 = vld [vmem:[#allocation2 + $0x1f4] sm:$0xf]  ;;  %v2994_v14 = vld [vmem:[#allocation2 + $0x1f8] sm:$0xf0]  ;;  %v2794_v21 = vld [vmem:[#allocation2 + $0x68] sm:$0xf0]  ;;  %v2933_v29 = vor.u32 %v3979_v10, %v2930_v12 }
  0x48   :  { %1014 = vmatpush.bf16.msrb.mxu3 %v3225_v27  ;;  %v128_v19 = vld.sshfl [vmem:[#allocation1 + $0x30] sm:$0xff pattern:$0x73625140]  ;;  %v126_v24 = vld.sshfl [vmem:[#allocation1 + $0x20] sm:$0xff pattern:$0x73625140]  ;;  %v2997_v32 = vor.u32 %v3995_v13, %v2994_v14  ;;  %v2797_v41 = vor.u32 %v3945_v20, %v2794_v21 }
  0x49   :  { %976 = vmatpush.bf16.msrb.mxu0 %v3025_v33  ;;  %v129_v27 = vld.sshfl [vmem:[#allocation1 + $0x38] sm:$0xff pattern:$0x73625140]  ;;  %v127_v31 = vld.sshfl [vmem:[#allocation1 + $0x28] sm:$0xff pattern:$0x73625140]  ;;  %v4566_v33 = vpack.c.bf16 %v128_v19, %v128_v19  ;;  %v4568_v37 = vpack.c.bf16 %v126_v24, %v126_v24 }
  0x4a   :  { %989 = vmatpush.bf16.msrb.mxu1 %v3089_v34  ;;  %v2858_v34 = vld [vmem:[#allocation2 + $0xe8] sm:$0xf0]  ;;  %v4570_v38 = vpack.c.bf16 %v129_v27, %v129_v27  ;;  %v4572_v42 = vpack.c.bf16 %v127_v31, %v127_v31  ;;  %v3943_v45 = vld [vmem:[#allocation2 + $0x54] sm:$0xf]  ;;  %v2850_v49 = vld [vmem:[#allocation2 + $0xd8] sm:$0xf0] }
  0x4b   :  { %1002 = vmatpush.bf16.msrb.mxu2 %v3153_v35  ;;  %v3977_v35 = vld [vmem:[#allocation2 + $0x164] sm:$0xf]  ;;  %v2922_v36 = vld [vmem:[#allocation2 + $0x168] sm:$0xf0]  ;;  %v2861_v43 = vor.u32 %v3961_v30, %v2858_v34  ;;  %v3975_v50 = vld [vmem:[#allocation2 + $0x154] sm:$0xf] }
  0x4c   :  { %1015 = vmatpush.bf16.msrb.mxu3 %v3217_v39  ;;  %v3993_v39 = vld [vmem:[#allocation2 + $0x1e4] sm:$0xf]  ;;  %v2986_v40 = vld [vmem:[#allocation2 + $0x1e8] sm:$0xf0]  ;;  %v2925_v44 = vor.u32 %v3977_v35, %v2922_v36  ;;  %v2914_v51 = vld [vmem:[#allocation2 + $0x158] sm:$0xf0] }
  0x4d   :  { %977 = vmatpush.bf16.msrb.mxu0 %v3017_v46  ;;  %v2786_v46 = vld [vmem:[#allocation2 + $0x58] sm:$0xf0]  ;;  %v2917_v56 = vor.u32 %v3975_v50, %v2914_v51  ;;  %v3941_v57 = vld [vmem:[#allocation2 + $0x44] sm:$0xf]  ;;  %v2778_v58 = vld [vmem:[#allocation2 + $0x48] sm:$0xf0] }
  0x4e   :  { %990 = vmatpush.bf16.msrb.mxu1 %v3081_v47  ;;  %v3959_v47 = vld [vmem:[#allocation2 + $0xd4] sm:$0xf]  ;;  %v2978_v53 = vld [vmem:[#allocation2 + $0x1d8] sm:$0xf0]  ;;  %v2789_v54 = vor.u32 %v3943_v45, %v2786_v46  ;;  %v2842_v61 = vld [vmem:[#allocation2 + $0xc8] sm:$0xf0]  ;;  %v2781_v2 = vor.u32 %v3941_v57, %v2778_v58 }
  0x4f   :  { %1003 = vmatpush.bf16.msrb.mxu2 %v3145_v48  ;;  %v2989_v48 = vor.u32 %v3993_v39, %v2986_v40  ;;  %v2853_v55 = vor.u32 %v3959_v47, %v2850_v49  ;;  %v3973_v62 = vld [vmem:[#allocation2 + $0x144] sm:$0xf]  ;;  %v2970_v1 = vld [vmem:[#allocation2 + $0x1c8] sm:$0xf0]  ;;  %v3939_v5 = vld [vmem:[#allocation2 + $0x34] sm:$0xf] }
  0x50   :  { %1016 = vmatpush.bf16.msrb.mxu3 %v3209_v52  ;;  %v3991_v52 = vld [vmem:[#allocation2 + $0x1d4] sm:$0xf]  ;;  %v2770_v6 = vld [vmem:[#allocation2 + $0x38] sm:$0xf0]  ;;  %v3937_v19 = vld [vmem:[#allocation2 + $0x24] sm:$0xf] }
  0x51   :  { %978 = vmatpush.bf16.msrb.mxu0 %v3009_v59  ;;  %v3957_v59 = vld [vmem:[#allocation2 + $0xc4] sm:$0xf]  ;;  %v2981_v60 = vor.u32 %v3991_v52, %v2978_v53  ;;  %v3955_v7 = vld [vmem:[#allocation2 + $0xb4] sm:$0xf]  ;;  %v2834_v9 = vld [vmem:[#allocation2 + $0xb8] sm:$0xf0]  ;;  %v2773_v14 = vor.u32 %v3939_v5, %v2770_v6 }
  0x52   :  { %991 = vmatpush.bf16.msrb.mxu1 %v3073_v63  ;;  %v2906_v63 = vld [vmem:[#allocation2 + $0x148] sm:$0xf0]  ;;  %v2845_v3 = vor.u32 %v3957_v59, %v2842_v61  ;;  %v3971_v10 = vld [vmem:[#allocation2 + $0x134] sm:$0xf]  ;;  %v2962_v13 = vld [vmem:[#allocation2 + $0x1b8] sm:$0xf0] }
  0x53   :  { %1004 = vmatpush.bf16.msrb.mxu2 %v3137_v0  ;;  %v3989_v0 = vld [vmem:[#allocation2 + $0x1c4] sm:$0xf]  ;;  %v3987_v12 = vld [vmem:[#allocation2 + $0x1b4] sm:$0xf]  ;;  %v2762_v20 = vld [vmem:[#allocation2 + $0x28] sm:$0xf0] }
  0x54   :  { %1017 = vmatpush.bf16.msrb.mxu3 %v3201_v4  ;;  %v2909_v4 = vor.u32 %v3973_v62, %v2906_v63  ;;  %v2973_v8 = vor.u32 %v3989_v0, %v2970_v1  ;;  %v3953_v21 = vld [vmem:[#allocation2 + $0xa4] sm:$0xf]  ;;  %v2890_v27 = vld [vmem:[#allocation2 + $0x128] sm:$0xf0]  ;;  %v2765_v30 = vor.u32 %v3937_v19, %v2762_v20  ;;  %v3935_v34 = vld [vmem:[#allocation2 + $0x14] sm:$0xf] }
  0x55   :  { %979 = vmatpush.bf16.msrb.mxu0 %v3001_v11  ;;  %v2898_v11 = vld [vmem:[#allocation2 + $0x138] sm:$0xf0]  ;;  %v3969_v24 = vld [vmem:[#allocation2 + $0x124] sm:$0xf]  ;;  %v3951_v36 = vld [vmem:[#allocation2 + $0x94] sm:$0xf] }
  0x56   :  { %992 = vmatpush.bf16.msrb.mxu1 %v3065_v15  ;;  %v2837_v15 = vor.u32 %v3955_v7, %v2834_v9  ;;  %v2754_v35 = vld [vmem:[#allocation2 + $0x18] sm:$0xf0]  ;;  %v3933_v47 = vld [vmem:[#allocation2 + $0x4] sm:$0xf]  ;;  %v2810_v52 = vld [vmem:[#allocation2 + $0x88] sm:$0xf0] }
  0x57   :  { %1005 = vmatpush.bf16.msrb.mxu2 %v3129_v16  ;;  %v2901_v16 = vor.u32 %v3971_v10, %v2898_v11  ;;  %v2818_v40 = vld [vmem:[#allocation2 + $0x98] sm:$0xf0]  ;;  %v2757_v46 = vor.u32 %v3935_v34, %v2754_v35  ;;  %v3949_v51 = vld [vmem:[#allocation2 + $0x84] sm:$0xf]  ;;  %v2938_v57 = vld [vmem:[#allocation2 + $0x188] sm:$0xf0] }
  0x58   :  { %1018 = vmatpush.bf16.msrb.mxu3 %v3193_v22  ;;  %980 = vmatmul.bf16.vlgmr.msrb.gmra.mxu0 %v4568_v37  ;;  %v2965_v22 = vor.u32 %v3987_v12, %v2962_v13  ;;  %v2946_v45 = vld [vmem:[#allocation2 + $0x198] sm:$0xf0]  ;;  %v2821_v49 = vor.u32 %v3951_v36, %v2818_v40  ;;  %v3965_v53 = vld [vmem:[#allocation2 + $0x104] sm:$0xf]  ;;  %v4011_v58 = vld [vmem:[#allocation2 + $0x274] sm:$0xf]  ;;  %v2813_v1 = vor.u32 %v3949_v51, %v2810_v52 }
  0x59   :  { %1024 = vmatpush.bf16.msra.mxu0 %v2805_v23  ;;  %993 = vmatmul.bf16.vlgmr.msrb.gmra.mxu1 %v4572_v42  ;;  %v2826_v23 = vld [vmem:[#allocation2 + $0xa8] sm:$0xf0]  ;;  %v3058_v59 = vld [vmem:[#allocation2 + $0x278] sm:$0xf0]  ;;  %v4043_v63 = vld [vmem:[#allocation2 + $0x374] sm:$0xf] }
  0x5a   :  { %1037 = vmatpush.bf16.msra.mxu1 %v2869_v28  ;;  %1006 = vmatmul.bf16.vlgmr.msrb.gmra.mxu2 %v4566_v33  ;;  %v3985_v28 = vld [vmem:[#allocation2 + $0x1a4] sm:$0xf]  ;;  %v2829_v31 = vor.u32 %v3953_v21, %v2826_v23  ;;  %v3122_v62 = vld [vmem:[#allocation2 + $0x2f8] sm:$0xf0]  ;;  %v3061_v6 = vor.u32 %v4011_v58, %v3058_v59  ;;  %v3114_v12 = vld [vmem:[#allocation2 + $0x2e8] sm:$0xf0] }
  0x5b   :  { %1050 = vmatpush.bf16.msra.mxu2 %v2933_v29  ;;  %1019 = vmatmul.bf16.vlgmr.msrb.gmra.mxu3 %v4570_v38  ;;  %v2954_v29 = vld [vmem:[#allocation2 + $0x1a8] sm:$0xf0]  ;;  %v3186_v0 = vld [vmem:[#allocation2 + $0x378] sm:$0xf0]  ;;  %v4009_v7 = vld [vmem:[#allocation2 + $0x264] sm:$0xf] }
  0x5c   :  { %1063 = vmatpush.bf16.msra.mxu3 %v2997_v32  ;;  %v2893_v32 = vor.u32 %v3969_v24, %v2890_v27  ;;  %v2957_v39 = vor.u32 %v3985_v28, %v2954_v29  ;;  %v4025_v9 = vld [vmem:[#allocation2 + $0x2e4] sm:$0xf]  ;;  %v3189_v11 = vor.u32 %v4043_v63, %v3186_v0  ;;  %v3242_v19 = vld [vmem:[#allocation2 + $0x3e8] sm:$0xf0]  ;;  %v4007_v23 = vld [vmem:[#allocation2 + $0x254] sm:$0xf] }
  0x5d   :  { %1025 = vmatpush.bf16.msra.mxu0 %v2797_v41  ;;  %v3967_v41 = vld [vmem:[#allocation2 + $0x114] sm:$0xf]  ;;  %v4041_v13 = vld [vmem:[#allocation2 + $0x364] sm:$0xf]  ;;  %v3117_v21 = vor.u32 %v4025_v9, %v3114_v12  ;;  %v3042_v24 = vld [vmem:[#allocation2 + $0x258] sm:$0xf0] }
  0x5e   :  { %1038 = vmatpush.bf16.msra.mxu1 %v2861_v43  ;;  %v2882_v43 = vld [vmem:[#allocation2 + $0x118] sm:$0xf0]  ;;  %v4023_v27 = vld [vmem:[#allocation2 + $0x2d4] sm:$0xf]  ;;  %v3045_v35 = vor.u32 %v4007_v23, %v3042_v24  ;;  %v4005_v40 = vld [vmem:[#allocation2 + $0x244] sm:$0xf] }
  0x5f   :  { %1051 = vmatpush.bf16.msra.mxu2 %v2925_v44  ;;  %v3983_v44 = vld [vmem:[#allocation2 + $0x194] sm:$0xf]  ;;  %v2885_v50 = vor.u32 %v3967_v41, %v2882_v43  ;;  %v3106_v29 = vld [vmem:[#allocation2 + $0x2d8] sm:$0xf0]  ;;  %v3034_v41 = vld [vmem:[#allocation2 + $0x248] sm:$0xf0] }
  0x60   :  { %1064 = vmatpush.bf16.msra.mxu3 %v2989_v48  ;;  %v2746_v48 = vld [vmem:[#allocation2 + $0x8] sm:$0xf0]  ;;  %v3234_v34 = vld [vmem:[#allocation2 + $0x3d8] sm:$0xf0]  ;;  %v3109_v36 = vor.u32 %v4023_v27, %v3106_v29  ;;  %v4019_v51 = vld [vmem:[#allocation2 + $0x2b4] sm:$0xf] }
  0x61   :  { %1026 = vmatpush.bf16.msra.mxu0 %v2789_v54  ;;  %v2949_v54 = vor.u32 %v3983_v44, %v2946_v45  ;;  %v2749_v61 = vor.u32 %v3933_v47, %v2746_v48  ;;  %v3098_v44 = vld [vmem:[#allocation2 + $0x2c8] sm:$0xf0]  ;;  %v4037_v45 = vld [vmem:[#allocation2 + $0x344] sm:$0xf]  ;;  %v3999_v9 = vld [vmem:[#allocation2 + $0x214] sm:$0xf] }
  0x62   :  { %1039 = vmatpush.bf16.msra.mxu1 %v2853_v55  ;;  %v2874_v55 = vld [vmem:[#allocation2 + $0x108] sm:$0xf0]  ;;  %v4053_v47 = vld [vmem:[#allocation2 + $0x3c4] sm:$0xf]  ;;  %vm1445_vm14 = vcmask 58368   ;;  %s2725_s19 = sshll.u32 %s4702_s15, 4  ;;  %s2726_s19 = int_to_ptr.hbm [resolvable:$true] %s2725_s19 }
  0x63   :  { %1052 = vmatpush.bf16.msra.mxu2 %v2917_v56  ;;  %v3981_v56 = vld [vmem:[#allocation2 + $0x184] sm:$0xf]  ;;  %v3002_v24 = vld [vmem:[#allocation2 + $0x208] sm:$0xf0]  ;;  %s2714_s22 = sshll.u32 %s4701_s14, 4  ;;  %s2715_s22 = int_to_ptr.hbm [resolvable:$true] %s2714_s22 }
  0x64   :  { %1065 = vmatpush.bf16.msra.mxu3 %v2981_v60  ;;  %v4027_v60 = vld [vmem:[#allocation2 + $0x2f4] sm:$0xf]  ;;  %v2941_v5 = vor.u32 %v3981_v56, %v2938_v57  ;;  %v3218_v57 = vld [vmem:[#allocation2 + $0x3b8] sm:$0xf0]  ;;  %v4017_v63 = vld [vmem:[#allocation2 + $0x2a4] sm:$0xf] }
  0x65   :  { %1027 = vmatpush.bf16.msra.mxu0 %v2781_v2  ;;  %v2877_v2 = vor.u32 %v3965_v53, %v2874_v55  ;;  %v3125_v10 = vor.u32 %v4027_v60, %v3122_v62  ;;  %v3090_v53 = vld [vmem:[#allocation2 + $0x2b8] sm:$0xf0]  ;;  %v4051_v56 = vld [vmem:[#allocation2 + $0x3b4] sm:$0xf]  ;;  %v3018_v62 = vld [vmem:[#allocation2 + $0x228] sm:$0xf0] }
  0x66   :  { %1040 = vmatpush.bf16.msra.mxu1 %v2845_v3  ;;  %v4059_v3 = vld [vmem:[#allocation2 + $0x3f4] sm:$0xf]  ;;  %v3154_v55 = vld [vmem:[#allocation2 + $0x338] sm:$0xf0]  ;;  %v3093_v59 = vor.u32 %v4019_v51, %v3090_v53  ;;  %v3221_v0 = vor.u32 %v4051_v56, %v3218_v57  ;;  %v3997_v23 = vld [vmem:[#allocation2 + $0x204] sm:$0xf] }
  0x67   :  { %1053 = vmatpush.bf16.msra.mxu2 %v2909_v4  ;;  %v3250_v4 = vld [vmem:[#allocation2 + $0x3f8] sm:$0xf0]  ;;  %v4013_v27 = vld [vmem:[#allocation2 + $0x284] sm:$0xf]  ;;  %v3066_v29 = vld [vmem:[#allocation2 + $0x288] sm:$0xf0] }
  0x68   :  { %1066 = vmatpush.bf16.msra.mxu3 %v2973_v8  ;;  %v3050_v8 = vld [vmem:[#allocation2 + $0x268] sm:$0xf0]  ;;  %v4064_v51 = vld [vmem:[#allocation5 + $0x18] sm:$0xff] }
  0x69   :  { %1028 = vmatpush.bf16.msra.mxu0 %v2773_v14  ;;  %v3253_v14 = vor.u32 %v4059_v3, %v3250_v4  ;;  %v3053_v20 = vor.u32 %v4009_v7, %v3050_v8  ;;  %v3146_v3 = vld [vmem:[#allocation2 + $0x328] sm:$0xf0]  ;;  %v4049_v4 = vld [vmem:[#allocation2 + $0x3a4] sm:$0xf] }
  0x6a   :  { %1041 = vmatpush.bf16.msra.mxu1 %v2837_v15  ;;  %v3178_v15 = vld [vmem:[#allocation2 + $0x368] sm:$0xf0] }
  0x6b   :  { %1054 = vmatpush.bf16.msra.mxu2 %v2901_v16  ;;  %v4057_v16 = vld [vmem:[#allocation2 + $0x3e4] sm:$0xf] }
  0x6c   :  { %1067 = vmatpush.bf16.msra.mxu3 %v2965_v22  ;;  %v3181_v22 = vor.u32 %v4041_v13, %v3178_v15  ;;  %v3245_v28 = vor.u32 %v4057_v16, %v3242_v19  ;;  %v3074_v13 = vld [vmem:[#allocation2 + $0x298] sm:$0xf0]  ;;  %v4047_v16 = vld [vmem:[#allocation2 + $0x394] sm:$0xf] }
  0x6d   :  { %1029 = vmatpush.bf16.msra.mxu0 %v2765_v30  ;;  %v4039_v30 = vld [vmem:[#allocation2 + $0x354] sm:$0xf]  ;;  %v3138_v15 = vld [vmem:[#allocation2 + $0x318] sm:$0xf0] }
  0x6e   :  { %1042 = vmatpush.bf16.msra.mxu1 %v2829_v31  ;;  %v3170_v31 = vld [vmem:[#allocation2 + $0x358] sm:$0xf0] }
  0x6f   :  { %1055 = vmatpush.bf16.msra.mxu2 %v2893_v32  ;;  %v4055_v32 = vld [vmem:[#allocation2 + $0x3d4] sm:$0xf]  ;;  %v3202_v19 = vld [vmem:[#allocation2 + $0x398] sm:$0xf0] }
  0x70   :  { %1068 = vmatpush.bf16.msra.mxu3 %v2957_v39  ;;  %v3173_v39 = vor.u32 %v4039_v30, %v3170_v31  ;;  %v3237_v43 = vor.u32 %v4055_v32, %v3234_v34  ;;  %v4029_v30 = vld [vmem:[#allocation2 + $0x304] sm:$0xf]  ;;  %v3130_v31 = vld [vmem:[#allocation2 + $0x308] sm:$0xf0] }
  0x71   :  { %1030 = vmatpush.bf16.msra.mxu0 %v2757_v46  ;;  %v3162_v46 = vld [vmem:[#allocation2 + $0x348] sm:$0xf0]  ;;  %v4045_v32 = vld [vmem:[#allocation2 + $0x384] sm:$0xf] }
  0x72   :  { %1043 = vmatpush.bf16.msra.mxu1 %v2821_v49  ;;  %v4003_v49 = vld [vmem:[#allocation2 + $0x234] sm:$0xf]  ;;  %v3194_v34 = vld [vmem:[#allocation2 + $0x388] sm:$0xf0] }
  0x73   :  { %1056 = vmatpush.bf16.msra.mxu2 %v2885_v50  ;;  %v3026_v50 = vld [vmem:[#allocation2 + $0x238] sm:$0xf0] }
  0x74   :  { %1069 = vmatpush.bf16.msra.mxu3 %v2949_v54  ;;  %v4035_v54 = vld [vmem:[#allocation2 + $0x334] sm:$0xf]  ;;  %v3029_v58 = vor.u32 %v4003_v49, %v3026_v50  ;;  %v4065_v49 = vld [vmem:[#allocation5 + $0x20] sm:$0xff] }
  0x75   :  { %1031 = vmatpush.bf16.msra.mxu0 %v2749_v61  ;;  %v3157_v60 = vor.u32 %v4035_v54, %v3154_v55  ;;  %v4001_v61 = vld [vmem:[#allocation2 + $0x224] sm:$0xf]  ;;  %v4063_v54 = vld [vmem:[#allocation5 + $0x10] sm:$0xff] }
  0x76   :  { %1044 = vmatpush.bf16.msra.mxu1 %v2813_v1  ;;  %v3082_v1 = vld [vmem:[#allocation2 + $0x2a8] sm:$0xf0] }
  0x77   :  { %1057 = vmatpush.bf16.msra.mxu2 %v2877_v2  ;;  %v4033_v2 = vld [vmem:[#allocation2 + $0x324] sm:$0xf]  ;;  %v3085_v7 = vor.u32 %v4017_v63, %v3082_v1 }
  0x78   :  { %1070 = vmatpush.bf16.msra.mxu3 %v2941_v5  ;;  %1032 = vmatmul.bf16.vlgmr.msra.gmra.mxu0 %v4553_v18  ;;  %v3226_v18 = vld [vmem:[#allocation2 + $0x3c8] sm:$0xf0]  ;;  %v3149_v8 = vor.u32 %v4033_v2, %v3146_v3 }
  0x79   :  { %1076 = vmatpush.bf16.msrb.mxu0 %v3061_v6  ;;  %1045 = vmatmul.bf16.vlgmr.msra.gmra.mxu1 %v4557_v26  ;;  %v3165_v26 = vor.u32 %v4037_v45, %v3162_v46  ;;  %v3229_v52 = vor.u32 %v4053_v47, %v3226_v18  ;;  %v3210_v5 = vld [vmem:[#allocation2 + $0x3a8] sm:$0xf0]  ;;  %v3021_v6 = vor.u32 %v4001_v61, %v3018_v62 }
  0x7a   :  { %1089 = vmatpush.bf16.msrb.mxu1 %v3125_v10  ;;  %1058 = vmatmul.bf16.vlgmr.msra.gmra.mxu2 %v4551_v17  ;;  %v4021_v17 = vld [vmem:[#allocation2 + $0x2c4] sm:$0xf]  ;;  %v3010_v10 = vld [vmem:[#allocation2 + $0x218] sm:$0xf0]  ;;  %v3213_v12 = vor.u32 %v4049_v4, %v3210_v5 }
  0x7b   :  { %1102 = vmatpush.bf16.msrb.mxu2 %v3189_v11  ;;  %1071 = vmatmul.bf16.vlgmr.msra.gmra.mxu3 %v4555_v25  ;;  %v3037_v25 = vor.u32 %v4005_v40, %v3034_v41  ;;  %v3101_v48 = vor.u32 %v4021_v17, %v3098_v44  ;;  %v4015_v11 = vld [vmem:[#allocation2 + $0x294] sm:$0xf]  ;;  %v3197_v40 = vor.u32 %v4045_v32, %v3194_v34  ;;  %v4589_v41 = vld [vmem:[%s4690_s3] sm:$0x3] }
  0x7c   :  { %1115 = vmatpush.bf16.msrb.mxu3 %v3253_v14  ;;  %v4031_v14 = vld [vmem:[#allocation2 + $0x314] sm:$0xf]  ;;  %v4068_v44 = vld [vmem:[#allocation5 + $0x38] sm:$0xff]  ;;  %v276_v45 = vperm.slane %v4589_v41, 0 }
  0x7d   :  { %1077 = vmatpush.bf16.msrb.mxu0 %v3053_v20  ;;  %v3013_v20 = vor.u32 %v3999_v9, %v3010_v10 }
  0x7e   :  { %1090 = vmatpush.bf16.msrb.mxu1 %v3117_v21  ;;  %v3077_v21 = vor.u32 %v4015_v11, %v3074_v13 }
  0x7f   :  { %1103 = vmatpush.bf16.msrb.mxu2 %v3181_v22  ;;  %v3141_v22 = vor.u32 %v4031_v14, %v3138_v15 }
  0x80   :  { %1116 = vmatpush.bf16.msrb.mxu3 %v3245_v28  ;;  %v3205_v28 = vor.u32 %v4047_v16, %v3202_v19 }
  0x81   :  { %1078 = vmatpush.bf16.msrb.mxu0 %v3045_v35  ;;  %v3005_v35 = vor.u32 %v3997_v23, %v3002_v24 }
  0x82   :  { %1091 = vmatpush.bf16.msrb.mxu1 %v3109_v36  ;;  %v3069_v36 = vor.u32 %v4013_v27, %v3066_v29  ;;  %v4076_v27 = vld [vmem:[#allocation5 + $0x78] sm:$0xff] }
  0x83   :  { %1104 = vmatpush.bf16.msrb.mxu2 %v3173_v39  ;;  %v3133_v39 = vor.u32 %v4029_v30, %v3130_v31  ;;  %v277_v30 = vperm.slane %v4589_v41, 1  ;;  %v4075_v31 = vld [vmem:[#allocation5 + $0x70] sm:$0xff]  ;;  %v4070_v41 = vld [vmem:[#allocation5 + $0x48] sm:$0xff] }
  0x84   :  { %1117 = vmatpush.bf16.msrb.mxu3 %v3237_v43 }
  0x85   :  { %1079 = vmatpush.bf16.msrb.mxu0 %v3037_v25  ;;  %v4066_v25 = vld [vmem:[#allocation5 + $0x28] sm:$0xff] }
  0x86   :  { %1092 = vmatpush.bf16.msrb.mxu1 %v3101_v48 }
  0x87   :  { %1105 = vmatpush.bf16.msrb.mxu2 %v3165_v26 }
  0x88   :  { %1118 = vmatpush.bf16.msrb.mxu3 %v3229_v52 }
  0x89   :  { %1080 = vmatpush.bf16.msrb.mxu0 %v3029_v58  ;;  %v4062_v58 = vld [vmem:[#allocation5 + $0x8] sm:$0xff] }
  0x8a   :  { %1093 = vmatpush.bf16.msrb.mxu1 %v3093_v59 }
  0x8b   :  { %1106 = vmatpush.bf16.msrb.mxu2 %v3157_v60 }
  0x8c   :  { %1119 = vmatpush.bf16.msrb.mxu3 %v3221_v0  ;;  %v4061_v0 = vld [vmem:[#allocation5] sm:$0xff] }
  0x8d   :  { %1081 = vmatpush.bf16.msrb.mxu0 %v3021_v6 }
  0x8e   :  { %1094 = vmatpush.bf16.msrb.mxu1 %v3085_v7 }
  0x8f   :  { %1107 = vmatpush.bf16.msrb.mxu2 %v3149_v8 }
  0x90   :  { %1120 = vmatpush.bf16.msrb.mxu3 %v3213_v12 }
  0x91   :  { %1082 = vmatpush.bf16.msrb.mxu0 %v3013_v20 }
  0x92   :  { %1095 = vmatpush.bf16.msrb.mxu1 %v3077_v21 }
  0x93   :  { %1108 = vmatpush.bf16.msrb.mxu2 %v3141_v22 }
  0x94   :  { %1121 = vmatpush.bf16.msrb.mxu3 %v3205_v28 }
  0x95   :  { %1083 = vmatpush.bf16.msrb.mxu0 %v3005_v35 }
  0x96   :  { %1096 = vmatpush.bf16.msrb.mxu1 %v3069_v36  ;;  %v4074_v36 = vld [vmem:[#allocation5 + $0x68] sm:$0xff] }
  0x97   :  { %1109 = vmatpush.bf16.msrb.mxu2 %v3133_v39 }
  0x98   :  { %1122 = vmatpush.bf16.msrb.mxu3 %v3197_v40  ;;  %1084 = vmatmul.bf16.vlgmr.msrb.gmra.mxu0 %v4568_v37  ;;  %v4067_v37 = vld [vmem:[#allocation5 + $0x30] sm:$0xff]  ;;  %v4073_v40 = vld [vmem:[#allocation5 + $0x60] sm:$0xff] }
  0x99   :  { %1097 = vmatmul.bf16.vlgmr.msrb.gmra.mxu1 %v4572_v42  ;;  %1302 = vmatpush.bf16.msra.mxu0 %v4068_v44 }
  0x9a   :  { %1110 = vmatmul.bf16.vlgmr.msrb.gmra.mxu2 %v4566_v33  ;;  %1315 = vmatpush.bf16.msra.mxu1 %v4076_v27 }
  0x9b   :  { %1123 = vmatmul.bf16.vlgmr.msrb.gmra.mxu3 %v4570_v38 }
  0x9d   :  { %1303 = vmatpush.bf16.msra.mxu0 %v4067_v37 }
  0x9e   :  { %1316 = vmatpush.bf16.msra.mxu1 %v4075_v31 }
  0xa1   :  { %1304 = vmatpush.bf16.msra.mxu0 %v4066_v25 }
  0xa2   :  { %1317 = vmatpush.bf16.msra.mxu1 %v4074_v36 }
  0xa5   :  { %1305 = vmatpush.bf16.msra.mxu0 %v4065_v49 }
  0xa6   :  { %1318 = vmatpush.bf16.msra.mxu1 %v4073_v40 }
  0xa9   :  { %1306 = vmatpush.bf16.msra.mxu0 %v4064_v51 }
  0xad   :  { %1307 = vmatpush.bf16.msra.mxu0 %v4063_v54 }
  0xb1   :  { %1308 = vmatpush.bf16.msra.mxu0 %v4062_v58 }
  0xb5   :  { %1309 = vmatpush.bf16.msra.mxu0 %v4061_v0 }
  0xb7   :  { %v929_v17 = vpop.f32.mrf.mxu0 }
  0xb8   :  { %v930_v18 = vadd.f32 %v929_v17, %v276_v45 }
  0xba   :  { %v942_v43 = vpop.f32.mrf.mxu1 }
  0xbb   :  { %v943_v38 = vadd.f32 %v942_v43, %v930_v18  ;;  %v4072_v43 = vld [vmem:[#allocation5 + $0x58] sm:$0xff] }
  0xbc   :  { %1319 = vmatpush.bf16.msra.mxu1 %v4072_v43 }
  0xbe   :  { %v968_v47 = vpop.f32.mrf.mxu3 }
  0xbf   :  { %v955_v46 = vpop.f32.mrf.mxu2  ;;  %v931_v42 = vpop.f32.mrf.mxu0 }
  0xc0   :  { %v956_v50 = vadd.f32 %v955_v46, %v943_v38  ;;  %v4071_v46 = vld [vmem:[#allocation5 + $0x50] sm:$0xff] }
  0xc1   :  { %1320 = vmatpush.bf16.msra.mxu1 %v4071_v46 }
  0xc2   :  { %v944_v33 = vpop.f32.mrf.mxu1  ;;  %v969_v52 = vadd.f32 %v968_v47, %v956_v50 }
  0xc5   :  { %1321 = vmatpush.bf16.msra.mxu1 %v4070_v41 }
  0xc6   :  { %v970_v26 = vpop.f32.mrf.mxu3 }
  0xc7   :  { %v957_v48 = vpop.f32.mrf.mxu2 }
  0xc8   :  { %v4069_v48 = vld [vmem:[#allocation5 + $0x40] sm:$0xff] }
  0xc9   :  { %1322 = vmatpush.bf16.msra.mxu1 %v4069_v48 }
  0xd5   :  { %v981_v53 = vpop.f32.mrf.mxu0 }
  0xd6   :  { %v982_v55 = vadd.f32 %v981_v53, %v969_v52  ;;  %v994_v56 = vpop.f32.mrf.mxu1 }
  0xd8   :  { %v995_v57 = vadd.f32 %v994_v56, %v982_v55 }
  0xdd   :  { %v1007_v59 = vpop.f32.mrf.mxu2  ;;  %v983_v63 = vpop.f32.mrf.mxu0 }
  0xde   :  { %v1008_v60 = vadd.f32 %v1007_v59, %v995_v57  ;;  %v1020_v61 = vpop.f32.mrf.mxu3  ;;  %v996_v1 = vpop.f32.mrf.mxu1 }
  0xe0   :  { %v1021_v62 = vadd.f32 %v1020_v61, %v1008_v60 }
  0xe2   :  { %v3254_v2 = vmul.f32 -1.442695, %v1021_v62 }
  0xe4   :  { %4245 = vpow2.f32 %v3254_v2 }
  0xe5   :  { %v1009_v3 = vpop.f32.mrf.mxu2 }
  0xe6   :  { %v1022_v4 = vpop.f32.mrf.mxu3 }
  0xea   :  { %v4246_v5 = vpop.eup %4245 }
  0xeb   :  { %v1134_v6 = vadd.f32 1.0, %v4246_v5  ;;  %v4084_v5 = vld [vmem:[%s4693_s6 + $0x38] sm:$0xff] }
  0xec   :  { %1417 = vmatpush.bf16.msra.mxu2 %v4084_v5  ;;  %v4095_v5 = vld [vmem:[#allocation7 + $0x54] sm:$0xf] }
  0xed   :  { %4247 = vrcp.f32 %v1134_v6  ;;  %v1147_v11 = vand.u32 2147483648, %v1134_v6  ;;  %vm1141_vm0 = vweird.f32 %v1134_v6  ;;  %v1145_v14 = vand.u32 2147483647, %v1134_v6 }
  0xef   :  { %v1148_v16 = vor.u32 1.1754944e-38, %v1147_v11  ;;  %vm1146_vm3 = vcmp.eq.f32.partialorder %v1145_v14, 8.507059e+37  ;;  %v4242_v11 = vld [vmem:[%s4692_s5] ss:$0 sm:$0xff] }
  0xf0   :  { %v4077_v14 = vld [vmem:[%s4693_s6] sm:$0xff] }
  0xf3   :  { %v4248_v7 = vpop.eup %4247 }
  0xf4   :  { %v1137_v8 = vmul.f32 %v4248_v7, %v1134_v6  ;;  %vm1142_vm1 = vweird.f32 %v4248_v7  ;;  %v4083_v6 = vld [vmem:[%s4693_s6 + $0x30] sm:$0xff] }
  0xf5   :  { %v1033_v10 = vpop.f32.mrf.mxu0  ;;  %vm1143_vm2 = vmor %vm1141_vm0, %vm1142_vm1  ;;  %1418 = vmatpush.bf16.msra.mxu2 %v4083_v6 }
  0xf6   :  { %v1138_v9 = vsub.f32 1.0, %v1137_v8  ;;  %v1046_v12 = vpop.f32.mrf.mxu1  ;;  %v1034_v35 = vadd.f32 %v1033_v10, %v277_v30  ;;  %v4081_v8 = vld [vmem:[%s4693_s6 + $0x20] sm:$0xff]  ;;  %v4079_v10 = vld [vmem:[%s4693_s6 + $0x10] sm:$0xff] }
  0xf8   :  { %v1139_v13 = vmul.f32 %v4248_v7, %v1138_v9  ;;  %v1047_v39 = vadd.f32 %v1046_v12, %v1034_v35  ;;  %v4080_v9 = vld [vmem:[%s4693_s6 + $0x18] sm:$0xff]  ;;  %v4078_v12 = vld [vmem:[%s4693_s6 + $0x8] sm:$0xff] }
  0xfa   :  { %v1140_v15 = vadd.f32 %v4248_v7, %v1139_v13 }
  0xfc   :  { %v1144_v20 = vsel %vm1143_vm2, %v4248_v7, %v1140_v15  ;;  %v4082_v7 = vld [vmem:[%s4693_s6 + $0x28] sm:$0xff]  ;;  %s4451_s6 = smov 120  }
  0xfd   :  { %v1059_v19 = vpop.f32.mrf.mxu2  ;;  %v1149_v22 = vsel %vm1146_vm3, %v1148_v16, %v1144_v20  ;;  %v1035_v24 = vpop.f32.mrf.mxu0  ;;  %1419 = vmatpush.bf16.msra.mxu2 %v4082_v7  ;;  %v1450_v20 = vld [vmem:[%s4688_s1] sm:$0x3]  ;;  %v3399_v7 = vld [vmem:[#allocation7 + $0x58] sm:$0xf0] }
  0xfe   :  { %v1072_v21 = vpop.f32.mrf.mxu3  ;;  %v1166_v23 = vmul.f32 %v1149_v22, %v1021_v62  ;;  %v1048_v28 = vpop.f32.mrf.mxu1  ;;  %v1060_v17 = vadd.f32 %v1059_v19, %v1047_v39  ;;  %1452 = vrot.lane.b32.xlu0 %v1450_v20, %s4446_s16 }
 0x100   :  { %v1168_v29 = vpack.c.bf16 %v1166_v23, %v1166_v23  ;;  %v1073_v44 = vadd.f32 %v1072_v21, %v1060_v17  ;;  %v4243_v17 = vld [vmem:[%s4694_s7] ss:$0 sm:$0xff] }
 0x101   :  { %1420 = vmatpush.bf16.msra.mxu2 %v4081_v8  ;;  %v3402_v8 = vor.u32 %v4095_v5, %v3399_v7  ;;  %v4157_v7 = vld [vmem:[#allocation8 + $0x1c4] sm:$0xf] }
 0x102   :  { %1310 = vmatmul.bf16.vlgmr.msra.gmra.mxu0 %v1168_v29 }
 0x105   :  { %v1061_v32 = vpop.f32.mrf.mxu2  ;;  %1421 = vmatpush.bf16.msra.mxu2 %v4080_v9  ;;  %v3389_v9 = vld [vmem:[#allocation7 + $0x40] sm:$0xf] }
 0x106   :  { %v1074_v34 = vpop.f32.mrf.mxu3 }
 0x109   :  { %1422 = vmatpush.bf16.msra.mxu2 %v4079_v10  ;;  %v4094_v10 = vld [vmem:[#allocation7 + $0x44] sm:$0xf0] }
 0x10d   :  { %1423 = vmatpush.bf16.msra.mxu2 %v4078_v12  ;;  %v3390_v12 = vor.u32 %v4094_v10, %v3389_v9 }
 0x111   :  { %1424 = vmatpush.bf16.msra.mxu2 %v4077_v14 }
 0x115   :  { %v1085_v45 = vpop.f32.mrf.mxu0 }
 0x116   :  { %v1098_v47 = vpop.f32.mrf.mxu1  ;;  %v1086_v37 = vadd.f32 %v1085_v45, %v1073_v44 }
 0x118   :  { %v1099_v18 = vadd.f32 %v1098_v47, %v1086_v37 }
 0x11d   :  { %v1111_v42 = vpop.f32.mrf.mxu2  ;;  %v1087_v38 = vpop.f32.mrf.mxu0 }
 0x11e   :  { %v1112_v33 = vadd.f32 %v1111_v42, %v1099_v18  ;;  %v1124_v25 = vpop.f32.mrf.mxu3  ;;  %v1100_v26 = vpop.f32.mrf.mxu1  ;;  %v1462_v42 = vld [vmem:[%s4695_s8] sm:$0xf] }
 0x120   :  { %v1125_v49 = vadd.f32 %v1124_v25, %v1112_v33  ;;  %v1473_v33 = vsel %vm1471_vm12, %v1462_v42, 0 }
 0x121   :  { %1482 = vmatpush.bf16.msra.mxu3 %v1473_v33 }
 0x122   :  { %v3255_v50 = vmul.f32 -1.442695, %v1125_v49 }
 0x124   :  { %4249 = vpow2.f32 %v3255_v50 }
 0x125   :  { %v1113_v51 = vpop.f32.mrf.mxu2 }
 0x126   :  { %v1126_v52 = vpop.f32.mrf.mxu3 }
 0x12a   :  { %v4250_v53 = vpop.eup %4249 }
 0x12b   :  { %v1135_v54 = vadd.f32 1.0, %v4250_v53  ;;  %v3413_v53 = vld [vmem:[#allocation7 + $0x70] sm:$0xf] }
 0x12d   :  { %4251 = vrcp.f32 %v1135_v54  ;;  %v1162_v58 = vand.u32 2147483648, %v1135_v54  ;;  %v1160_v60 = vand.u32 2147483647, %v1135_v54  ;;  %vm1156_vm5 = vweird.f32 %v1135_v54 }
 0x12f   :  { %v1163_v62 = vor.u32 1.1754944e-38, %v1162_v58  ;;  %vm1161_vm7 = vcmp.eq.f32.partialorder %v1160_v60, 8.507059e+37  ;;  %v4098_v60 = vld [vmem:[#allocation7 + $0x64] sm:$0xf0] }
 0x133   :  { %v4252_v55 = vpop.eup %4251 }
 0x134   :  { %v1152_v56 = vmul.f32 %v4252_v55, %v1135_v54  ;;  %vm1157_vm4 = vweird.f32 %v4252_v55  ;;  %v4100_v54 = vld [vmem:[#allocation7 + $0x74] sm:$0xf0] }
 0x135   :  { %vm1158_vm6 = vmor %vm1156_vm5, %vm1157_vm4 }
 0x136   :  { %v1153_v57 = vsub.f32 1.0, %v1152_v56  ;;  %v3414_v56 = vor.u32 %v4100_v54, %v3413_v53 }
 0x138   :  { %v1154_v59 = vmul.f32 %v4252_v55, %v1153_v57  ;;  %v3415_v57 = vld [vmem:[#allocation7 + $0x78] sm:$0xf0]  ;;  %1611 = vmatpush.bf16.msrb.mxu3 %v3414_v56 }
 0x13a   :  { %v1155_v61 = vadd.f32 %v4252_v55, %v1154_v59  ;;  %v3405_v59 = vld [vmem:[#allocation7 + $0x60] sm:$0xf] }
 0x13c   :  { %v1159_v63 = vsel %vm1158_vm6, %v4252_v55, %v1155_v61  ;;  %v4099_v55 = vld [vmem:[#allocation7 + $0x74] sm:$0xf]  ;;  %v4097_v61 = vld [vmem:[#allocation7 + $0x64] sm:$0xf] }
 0x13d   :  { %v1164_v0 = vsel %vm1161_vm7, %v1163_v62, %v1159_v63  ;;  %v3418_v58 = vor.u32 %v4099_v55, %v3415_v57  ;;  %v3406_v62 = vor.u32 %v4098_v60, %v3405_v59  ;;  %v3407_v63 = vld [vmem:[#allocation7 + $0x68] sm:$0xf0]  ;;  %v4225_v59 = vld [vmem:[#allocation8 + $0x3dc] sm:$0xf0]  ;;  %v4221_v60 = vld [vmem:[#allocation8 + $0x3c4] sm:$0xf] }
 0x13e   :  { %v1167_v1 = vmul.f32 %v1164_v0, %v1125_v49 }
 0x13f   :  { %1624 = vmatpush.bf16.msrb.mxu0 %v3418_v58  ;;  %1612 = vmatpush.bf16.msrb.mxu3 %v3406_v62  ;;  %v3903_v58 = vld [vmem:[#allocation8 + $0x3c0] sm:$0xf]  ;;  %v3905_v62 = vld [vmem:[#allocation8 + $0x3e0] sm:$0xf0] }
 0x140   :  { %v1169_v2 = vpack.c.bf16 %v1167_v1, %v1167_v1  ;;  %v3410_v1 = vor.u32 %v4097_v61, %v3407_v63  ;;  %v3904_v61 = vor.u32 %v4225_v59, %v3903_v58  ;;  %v3871_v63 = vld [vmem:[#allocation8 + $0x380] sm:$0xf] }
 0x142   :  { %1323 = vmatmul.bf16.vlgmr.msra.gmra.mxu1 %v1169_v2  ;;  %2478 = vmatpush.bf16.msrb.mxu2 %v3904_v61  ;;  %v3711_v61 = vld [vmem:[#allocation8 + $0x240] sm:$0xf] }
 0x143   :  { %1625 = vmatpush.bf16.msrb.mxu0 %v3410_v1  ;;  %v3908_v1 = vor.u32 %v4221_v60, %v3905_v62  ;;  %v4177_v62 = vld [vmem:[#allocation8 + $0x25c] sm:$0xf0] }
 0x147   :  { %1626 = vmatpush.bf16.msrb.mxu0 %v3402_v8  ;;  %v3649_v8 = vld [vmem:[#allocation8 + $0x1e0] sm:$0xf0] }
 0x170   :  { %v1453_v37 = vpop.permute.xlu0 %1452 }
 0x17f   :  { %v1311_v3 = vpop.f32.mrf.mxu0 }
 0x180   :  { %v1312_v13 = vadd.f32 %v4242_v11, %v1311_v3  ;;  %v3397_v3 = vld [vmem:[#allocation7 + $0x50] sm:$0xf]  ;;  %v4093_v11 = vld [vmem:[#allocation7 + $0x44] sm:$0xf] }
 0x187   :  { %v1313_v4 = vpop.f32.mrf.mxu0 }
 0x188   :  { %v4096_v4 = vld [vmem:[#allocation7 + $0x54] sm:$0xf0] }
 0x189   :  { %v3398_v6 = vor.u32 %v4096_v4, %v3397_v3  ;;  %v3873_v3 = vld [vmem:[#allocation8 + $0x3a0] sm:$0xf0]  ;;  %v3647_v4 = vld [vmem:[#allocation8 + $0x1c0] sm:$0xf] }
 0x18b   :  { %1613 = vmatpush.bf16.msrb.mxu3 %v3398_v6  ;;  %v4161_v6 = vld [vmem:[#allocation8 + $0x1dc] sm:$0xf0] }
 0x18c   :  { %v3648_v10 = vor.u32 %v4161_v6, %v3647_v4  ;;  %v4121_v4 = vld [vmem:[#allocation8 + $0x9c] sm:$0xf0] }
 0x18e   :  { %2465 = vmatpush.bf16.msrb.mxu1 %v3648_v10  ;;  %v4169_v10 = vld [vmem:[#allocation8 + $0x21c] sm:$0xf0] }
 0x18f   :  { %1614 = vmatpush.bf16.msrb.mxu3 %v3390_v12  ;;  %v3839_v12 = vld [vmem:[#allocation8 + $0x340] sm:$0xf] }
 0x1bf   :  { %v1324_v15 = vpop.f32.mrf.mxu1 }
 0x1c0   :  { %v1325_v16 = vadd.f32 %v1324_v15, %v1312_v13  ;;  %v3391_v13 = vld [vmem:[#allocation7 + $0x48] sm:$0xf0]  ;;  %v3381_v15 = vld [vmem:[#allocation7 + $0x30] sm:$0xf] }
 0x1c1   :  { %v3394_v14 = vor.u32 %v4093_v11, %v3391_v13  ;;  %v3652_v11 = vor.u32 %v4157_v7, %v3649_v8  ;;  %v4209_v13 = vld [vmem:[#allocation8 + $0x35c] sm:$0xf0]  ;;  %v3489_v7 = vld [vmem:[#allocation8 + $0xa0] sm:$0xf0] }
 0x1c2   :  { %v3320_v19 = vmul.f32 -1.442695, %v1325_v16 }
 0x1c3   :  { %1627 = vmatpush.bf16.msrb.mxu0 %v3394_v14  ;;  %v4205_v14 = vld [vmem:[#allocation8 + $0x344] sm:$0xf] }
 0x1c4   :  { %4253 = vpow2.f32 %v3320_v19  ;;  %v4091_v19 = vld [vmem:[#allocation7 + $0x34] sm:$0xf] }
 0x1c7   :  { %v1326_v21 = vpop.f32.mrf.mxu1 }
 0x1c8   :  { %v3383_v21 = vld [vmem:[#allocation7 + $0x38] sm:$0xf0] }
 0x1ca   :  { %v4254_v22 = vpop.eup %4253 }
 0x1cb   :  { %v1331_v23 = vadd.f32 1.0, %v4254_v22  ;;  %v3386_v22 = vor.u32 %v4091_v19, %v3383_v21  ;;  %v4153_v19 = vld [vmem:[#allocation8 + $0x19c] sm:$0xf0]  ;;  %v4149_v21 = vld [vmem:[#allocation8 + $0x184] sm:$0xf] }
 0x1cd   :  { %4255 = vrcp.f32 %v1331_v23  ;;  %v1343_v29 = vand.u32 2147483648, %v1331_v23  ;;  %v1341_v31 = vand.u32 2147483647, %v1331_v23  ;;  %vm1337_vm9 = vweird.f32 %v1331_v23  ;;  %1628 = vmatpush.bf16.msrb.mxu0 %v3386_v22  ;;  %v3617_v22 = vld [vmem:[#allocation8 + $0x1a0] sm:$0xf0] }
 0x1cf   :  { %v1344_v34 = vor.u32 1.1754944e-38, %v1343_v29  ;;  %vm1342_vm11 = vcmp.eq.f32.partialorder %v1341_v31, 8.507059e+37  ;;  %v3375_v29 = vld [vmem:[#allocation7 + $0x28] sm:$0xf0]  ;;  %v3365_v31 = vld [vmem:[#allocation7 + $0x10] sm:$0xf] }
 0x1d3   :  { %v4256_v24 = vpop.eup %4255 }
 0x1d4   :  { %v1333_v27 = vmul.f32 %v4256_v24, %v1331_v23  ;;  %vm1338_vm8 = vweird.f32 %v4256_v24  ;;  %v3373_v23 = vld [vmem:[#allocation7 + $0x20] sm:$0xf] }
 0x1d5   :  { %vm1339_vm10 = vmor %vm1337_vm9, %vm1338_vm8 }
 0x1d6   :  { %v1334_v28 = vsub.f32 1.0, %v1333_v27  ;;  %v4089_v27 = vld [vmem:[#allocation7 + $0x24] sm:$0xf] }
 0x1d8   :  { %v1335_v30 = vmul.f32 %v4256_v24, %v1334_v28 }
 0x1da   :  { %v1336_v32 = vadd.f32 %v4256_v24, %v1335_v30  ;;  %v3378_v30 = vor.u32 %v4089_v27, %v3375_v29  ;;  %v3807_v27 = vld [vmem:[#allocation8 + $0x300] sm:$0xf] }
 0x1dc   :  { %v1340_v35 = vsel %vm1339_vm10, %v4256_v24, %v1336_v32  ;;  %v4090_v24 = vld [vmem:[#allocation7 + $0x24] sm:$0xf0]  ;;  %1629 = vmatpush.bf16.msrb.mxu0 %v3378_v30  ;;  %v4088_v32 = vld [vmem:[#allocation7 + $0x14] sm:$0xf0]  ;;  %v3583_v30 = vld [vmem:[#allocation8 + $0x140] sm:$0xf] }
 0x1dd   :  { %v1345_v36 = vsel %vm1342_vm11, %v1344_v34, %v1340_v35  ;;  %v3374_v28 = vor.u32 %v4090_v24, %v3373_v23  ;;  %v4087_v34 = vld [vmem:[#allocation7 + $0x14] sm:$0xf]  ;;  %v3366_v35 = vor.u32 %v4088_v32, %v3365_v31  ;;  %v3840_v23 = vor.u32 %v4209_v13, %v3839_v12  ;;  %v4145_v31 = vld [vmem:[#allocation8 + $0x15c] sm:$0xf0]  ;;  %v4141_v32 = vld [vmem:[#allocation8 + $0x144] sm:$0xf] }
 0x1de   :  { %v1347_v39 = vmul.f32 %v1345_v36, %v1325_v16  ;;  %v4092_v16 = vld [vmem:[#allocation7 + $0x34] sm:$0xf0]  ;;  %v3367_v36 = vld [vmem:[#allocation7 + $0x18] sm:$0xf0]  ;;  %v3620_v24 = vor.u32 %v4149_v21, %v3617_v22  ;;  %v3681_v13 = vld [vmem:[#allocation8 + $0x220] sm:$0xf0] }
 0x1df   :  { %v3382_v20 = vor.u32 %v4092_v16, %v3381_v15  ;;  %v3841_v15 = vld [vmem:[#allocation8 + $0x360] sm:$0xf0]  ;;  %v3615_v16 = vld [vmem:[#allocation8 + $0x180] sm:$0xf]  ;;  %v3913_v21 = vld [vmem:[#allocation8 + $0x3e8] sm:$0xf0] }
 0x1e0   :  { %v1348_v40 = vpack.c.bf16 %v1347_v39, %v1347_v39  ;;  %v3370_v39 = vor.u32 %v4087_v34, %v3367_v36  ;;  %v3844_v29 = vor.u32 %v4205_v14, %v3841_v15  ;;  %v4197_v34 = vld [vmem:[#allocation8 + $0x304] sm:$0xf]  ;;  %v3911_v14 = vld [vmem:[#allocation8 + $0x3c8] sm:$0xf]  ;;  %v3455_v22 = vld [vmem:[#allocation8 + $0x40] sm:$0xf] }
 0x1e1   :  { %1615 = vmatpush.bf16.msrb.mxu3 %v3382_v20  ;;  %v3616_v20 = vor.u32 %v4153_v19, %v3615_v16  ;;  %v3585_v36 = vld [vmem:[#allocation8 + $0x160] sm:$0xf0]  ;;  %v4226_v15 = vld [vmem:[#allocation8 + $0x3e4] sm:$0xf0]  ;;  %vm2695_vm11 = vcmask 1041408  }
 0x1e2   :  { %1425 = vmatmul.bf16.vlgmr.msra.gmra.mxu2 %v1348_v40  ;;  %v4244_v40 = vld [vmem:[%s4696_s9] ss:$0 sm:$0xff]  ;;  %1630 = vmatpush.bf16.msrb.mxu0 %v3370_v39  ;;  %v3584_v39 = vor.u32 %v4145_v31, %v3583_v30  ;;  %v3912_v19 = vor.u32 %v4226_v15, %v3911_v14  ;;  %v3879_v31 = vld [vmem:[#allocation8 + $0x388] sm:$0xf]  ;;  %v3561_v15 = vld [vmem:[#allocation8 + $0x128] sm:$0xf0] }
 0x1e3   :  { %2466 = vmatpush.bf16.msrb.mxu1 %v3616_v20  ;;  %v4222_v20 = vld [vmem:[#allocation8 + $0x3cc] sm:$0xf] }
 0x1e5   :  { %1616 = vmatpush.bf16.msrb.mxu3 %v3374_v28  ;;  %v4201_v28 = vld [vmem:[#allocation8 + $0x31c] sm:$0xf0] }
 0x1e7   :  { %2467 = vmatpush.bf16.msrb.mxu1 %v3584_v39  ;;  %v3423_v39 = vld [vmem:[#allocation8] sm:$0xf] }
 0x1e9   :  { %1617 = vmatpush.bf16.msrb.mxu3 %v3366_v35  ;;  %v3809_v35 = vld [vmem:[#allocation8 + $0x320] sm:$0xf0] }
 0x265   :  { %v1426_v43 = vpop.f32.mrf.mxu2 }
 0x266   :  { %v1427_v44 = vadd.f32 %v4243_v17, %v1426_v43  ;;  %v3357_v17 = vld [vmem:[#allocation7] sm:$0xf]  ;;  %v4086_v43 = vld [vmem:[#allocation7 + $0x4] sm:$0xf0] }
 0x268   :  { %v1433_v45 = vmul.f32 %v1427_v44, %v1427_v44  ;;  %v1430_v46 = vmul.f32 1.442695, %v1427_v44  ;;  %v1432_v25 = vadd.f32 1.0, %v1427_v44 }
 0x26a   :  { %1435 = vrot.lane.b32.xlu1 %v1433_v45, %s4446_s16  ;;  %4257 = vpow2.f32 %v1430_v46  ;;  %v3358_v45 = vor.u32 %v4086_v43, %v3357_v17  ;;  %v3359_v46 = vld [vmem:[#allocation7 + $0x8] sm:$0xf0]  ;;  %v3551_v17 = vld [vmem:[#allocation8 + $0x100] sm:$0xf]  ;;  %v3808_v43 = vor.u32 %v4201_v28, %v3807_v27  ;;  %v4109_v27 = vld [vmem:[#allocation8 + $0x44] sm:$0xf] }
 0x26c   :  { %1618 = vmatpush.bf16.msrb.mxu3 %v3358_v45  ;;  %v4133_v45 = vld [vmem:[#allocation8 + $0x104] sm:$0xf] }
 0x26d   :  { %v1428_v47 = vpop.f32.mrf.mxu2 }
 0x270   :  { %v4258_v41 = vpop.eup %4257 }
 0x271   :  { %v1455_v18 = vmul.f32 %v4258_v41, %v1453_v37 }
 0x273   :  { %1457 = vrot.lane.b32.xlu0 %v1455_v18, %s4451_s6 }
 0x2dc   :  { %v1436_v38 = vpop.permute.xlu1 %1435 }
 0x2dd   :  { %v1438_v48 = vsub.f32 %v1432_v25, %v1436_v38 }
 0x2df   :  { %v1439_v26 = vsub.f32 %v1438_v48, %v4258_v41 }
 0x2e1   :  { %v1440_v49 = vmul.f32 -0.5, %v1439_v26 }
 0x2e3   :  { %1442 = vrot.lane.b32.xlu1 %v1440_v49, %s4451_s6 }
 0x2e5   :  { %v1458_v50 = vpop.permute.xlu0 %1457 }
 0x2e6   :  { %v1460_v51 = vadd.f32 %v1458_v50, %v1427_v44  ;;  %v4085_v44 = vld [vmem:[#allocation7 + $0x4] sm:$0xf] }
 0x2e7   :  { %v3362_v37 = vor.u32 %v4085_v44, %v3359_v46  ;;  %v4137_v44 = vld [vmem:[#allocation8 + $0x11c] sm:$0xf0]  ;;  %v3553_v46 = vld [vmem:[#allocation8 + $0x120] sm:$0xf0] }
 0x2e8   :  { %v1461_v52 = vpack.c.bf16 %v1460_v51, %v1460_v51 }
 0x2e9   :  { %1631 = vmatpush.bf16.msrb.mxu0 %v3362_v37  ;;  %v3775_v37 = vld [vmem:[#allocation8 + $0x2c0] sm:$0xf] }
 0x2ea   :  { %3353 = vmatmul.msk.bf16.vlgmr.msra.gmra.mxu3 %vm1467_vm13, %v1461_v52  ;;  %vm2697_vm13 = vcmask 1045508  }
 0x2eb   :  { %2491 = vmatpush.bf16.msra.mxu3 %v3652_v11  ;;  %v4165_v11 = vld [vmem:[#allocation8 + $0x204] sm:$0xf] }
 0x2ec   :  { %v3684_v16 = vor.u32 %v4165_v11, %v3681_v13  ;;  %v3559_v11 = vld [vmem:[#allocation8 + $0x108] sm:$0xf]  ;;  %v4134_v13 = vld [vmem:[#allocation8 + $0x10c] sm:$0xf] }
 0x2ed   :  { %2504 = vmatpush.bf16.msra.mxu0 %v3908_v1  ;;  %v3713_v1 = vld [vmem:[#allocation8 + $0x260] sm:$0xf0] }
 0x2ef   :  { %2492 = vmatpush.bf16.msra.mxu3 %v3620_v24  ;;  %v4113_v24 = vld [vmem:[#allocation8 + $0x5c] sm:$0xf0] }
 0x2f0   :  { %v3456_v28 = vor.u32 %v4113_v24, %v3455_v22  ;;  %v1525_v22 = vld [vmem:[%s4698_s11] sm:$0x3]  ;;  %v3753_v24 = vld [vmem:[#allocation8 + $0x2a8] sm:$0xf0]  ;;  %s4452_s11 = smov [#allocation11]  }
 0x2f1   :  { %s2723_s4 = sshll.u32 %s4452_s11, 4  ;;  %s2724_s4 = int_to_ptr.vmem [resolvable:$true] %s2723_s4 }
 0x355   :  { %v1443_v0 = vpop.permute.xlu1 %1442 }
 0x356   :  { %v1446_v2 = vsel %vm1445_vm14, %v1443_v0, 0.0  ;;  %v4217_v0 = vld [vmem:[#allocation8 + $0x39c] sm:$0xf0] }
 0x357   :  { %1447 = vadd.xlane.f32.xlu2 %v1446_v2  ;;  %v4213_v2 = vld [vmem:[#allocation8 + $0x384] sm:$0xf]  ;;  %v3872_v5 = vor.u32 %v4217_v0, %v3871_v63  ;;  %v3712_v0 = vor.u32 %v4177_v62, %v3711_v61  ;;  %v3817_v61 = vld [vmem:[#allocation8 + $0x328] sm:$0xf0] }
 0x358   :  { %v3876_v9 = vor.u32 %v4213_v2, %v3873_v3  ;;  %v4173_v63 = vld [vmem:[#allocation8 + $0x244] sm:$0xf]  ;;  %v3487_v3 = vld [vmem:[#allocation8 + $0x80] sm:$0xf] }
 0x359   :  { %2479 = vmatpush.bf16.msrb.mxu2 %v3872_v5  ;;  %v3716_v2 = vor.u32 %v4173_v63, %v3713_v1  ;;  %v4117_v5 = vld [vmem:[#allocation8 + $0x84] sm:$0xf]  ;;  %v3488_v6 = vor.u32 %v4121_v4, %v3487_v3  ;;  %v3591_v63 = vld [vmem:[#allocation8 + $0x148] sm:$0xf]  ;;  %v4142_v1 = vld [vmem:[#allocation8 + $0x14c] sm:$0xf] }
 0x35a   :  { %2505 = vmatpush.bf16.msra.mxu0 %v3876_v9  ;;  %v3492_v8 = vor.u32 %v4117_v5, %v3489_v7  ;;  %v3679_v9 = vld [vmem:[#allocation8 + $0x200] sm:$0xf]  ;;  %v3593_v3 = vld [vmem:[#allocation8 + $0x168] sm:$0xf0]  ;;  %v3783_v5 = vld [vmem:[#allocation8 + $0x2c8] sm:$0xf] }
 0x35b   :  { %v3680_v12 = vor.u32 %v4169_v10, %v3679_v9  ;;  %v3596_v4 = vor.u32 %v4142_v1, %v3593_v3  ;;  %v4190_v7 = vld [vmem:[#allocation8 + $0x2cc] sm:$0xf] }
 0x35c   :  { %v3785_v9 = vld [vmem:[#allocation8 + $0x2e8] sm:$0xf0] }
 0x35d   :  { %2480 = vmatpush.bf16.msrb.mxu2 %v3840_v23  ;;  %v3916_v23 = vor.u32 %v4222_v20, %v3913_v21  ;;  %v3788_v10 = vor.u32 %v4190_v7, %v3785_v9  ;;  %v4186_v20 = vld [vmem:[#allocation8 + $0x2a4] sm:$0xf0]  ;;  %v4182_v21 = vld [vmem:[#allocation8 + $0x28c] sm:$0xf] }
 0x35e   :  { %2506 = vmatpush.bf16.msra.mxu0 %v3844_v29  ;;  %v3457_v29 = vld [vmem:[#allocation8 + $0x60] sm:$0xf0]  ;;  %v3433_v1 = vld [vmem:[#allocation8 + $0x28] sm:$0xf0] }
 0x35f   :  { %v3460_v30 = vor.u32 %v4109_v27, %v3457_v29  ;;  %v3756_v27 = vor.u32 %v4182_v21, %v3753_v24  ;;  %v4130_v29 = vld [vmem:[#allocation8 + $0xe4] sm:$0xf0] }
 0x361   :  { %2481 = vmatpush.bf16.msrb.mxu2 %v3808_v43 }
 0x36d   :  { %v1484_v47 = vpop.f32.mrf.mxu3 }
 0x36e   :  { %v1485_v41 = vadd.f32 %v4244_v40, %v1484_v47  ;;  %v3588_v40 = vor.u32 %v4141_v32, %v3585_v36  ;;  %v3812_v47 = vor.u32 %v4197_v34, %v3809_v35  ;;  %v4218_v32 = vld [vmem:[#allocation8 + $0x3a4] sm:$0xf0]  ;;  %v4214_v34 = vld [vmem:[#allocation8 + $0x38c] sm:$0xf] }
 0x36f   :  { %v3880_v35 = vor.u32 %v4218_v32, %v3879_v31  ;;  %v3881_v36 = vld [vmem:[#allocation8 + $0x3a8] sm:$0xf0] }
 0x370   :  { %v3354_v18 = vmul.f32 -1.442695, %v1485_v41  ;;  %2493 = vmatpush.bf16.msra.mxu3 %v3588_v40  ;;  %2507 = vmatpush.bf16.msra.mxu0 %v3812_v47  ;;  %v4105_v40 = vld [vmem:[#allocation8 + $0x1c] sm:$0xf0]  ;;  %v3529_v32 = vld [vmem:[#allocation8 + $0xe8] sm:$0xf0] }
 0x371   :  { %v3424_v43 = vor.u32 %v4105_v40, %v3423_v39  ;;  %v4174_v39 = vld [vmem:[#allocation8 + $0x24c] sm:$0xf]  ;;  %v1528_v40 = vperm.slane %v1525_v22, 1 }
 0x372   :  { %4259 = vpow2.f32 %v3354_v18  ;;  %v4189_v18 = vld [vmem:[#allocation8 + $0x2c4] sm:$0xf] }
 0x375   :  { %v1486_v42 = vpop.f32.mrf.mxu3 }
 0x376   :  { %v3777_v42 = vld [vmem:[#allocation8 + $0x2e0] sm:$0xf0] }
 0x378   :  { %v4260_v33 = vpop.eup %4259 }
 0x379   :  { %v1491_v25 = vadd.f32 1.0, %v4260_v33  ;;  %v3552_v33 = vor.u32 %v4137_v44, %v3551_v17  ;;  %v3884_v17 = vor.u32 %v4214_v34, %v3881_v36  ;;  %v4101_v44 = vld [vmem:[#allocation8 + $0x4] sm:$0xf]  ;;  %v4178_v36 = vld [vmem:[#allocation8 + $0x264] sm:$0xf0] }
 0x37b   :  { %4261 = vrcp.f32 %v1491_v25  ;;  %v1503_v49 = vand.u32 2147483648, %v1491_v25  ;;  %v1501_v51 = vand.u32 2147483647, %v1491_v25  ;;  %vm1497_vm0 = vweird.f32 %v1491_v25  ;;  %2468 = vmatpush.bf16.msrb.mxu1 %v3552_v33 }
 0x37d   :  { %v1504_v53 = vor.u32 1.1754944e-38, %v1503_v49  ;;  %vm1502_vm2 = vcmp.eq.f32.partialorder %v1501_v51, 8.507059e+37  ;;  %v4125_v49 = vld [vmem:[#allocation8 + $0xc4] sm:$0xf]  ;;  %v3780_v51 = vor.u32 %v4189_v18, %v3777_v42  ;;  %v3657_v18 = vld [vmem:[#allocation8 + $0x1e8] sm:$0xf0] }
 0x37f   :  { %2508 = vmatpush.bf16.msra.mxu0 %v3780_v51  ;;  %v3623_v51 = vld [vmem:[#allocation8 + $0x188] sm:$0xf] }
 0x381   :  { %v4262_v38 = vpop.eup %4261 }
 0x382   :  { %v1493_v48 = vmul.f32 %v4262_v38, %v1491_v25  ;;  %vm1498_vm15 = vweird.f32 %v4262_v38  ;;  %v3556_v25 = vor.u32 %v4133_v45, %v3553_v46  ;;  %v3425_v45 = vld [vmem:[#allocation8 + $0x20] sm:$0xf0]  ;;  %v3655_v46 = vld [vmem:[#allocation8 + $0x1c8] sm:$0xf] }
 0x383   :  { %vm1499_vm1 = vmor %vm1497_vm0, %vm1498_vm15  ;;  %v3428_v47 = vor.u32 %v4101_v44, %v3425_v45  ;;  %v3495_v45 = vld [vmem:[#allocation8 + $0x88] sm:$0xf] }
 0x384   :  { %v1494_v26 = vsub.f32 1.0, %v1493_v48  ;;  %2494 = vmatpush.bf16.msra.mxu3 %v3556_v25  ;;  %v3847_v25 = vld [vmem:[#allocation8 + $0x348] sm:$0xf] }
 0x386   :  { %v1495_v50 = vmul.f32 %v4262_v38, %v1494_v26  ;;  %v4129_v26 = vld [vmem:[#allocation8 + $0xdc] sm:$0xf0] }
 0x388   :  { %v1496_v52 = vadd.f32 %v4262_v38, %v1495_v50  ;;  %v3521_v50 = vld [vmem:[#allocation8 + $0xe0] sm:$0xf0] }
 0x38a   :  { %v1500_v54 = vsel %vm1499_vm1, %v4262_v38, %v1496_v52  ;;  %v3519_v38 = vld [vmem:[#allocation8 + $0xc0] sm:$0xf] }
 0x38b   :  { %v1505_v55 = vsel %vm1502_vm2, %v1504_v53, %v1500_v54  ;;  %v3743_v52 = vld [vmem:[#allocation8 + $0x280] sm:$0xf]  ;;  %v4181_v54 = vld [vmem:[#allocation8 + $0x284] sm:$0xf] }
 0x38c   :  { %v1507_v56 = vmul.f32 %v1505_v55, %v1485_v41  ;;  %v4193_v41 = vld [vmem:[#allocation8 + $0x2dc] sm:$0xf0]  ;;  %v3745_v55 = vld [vmem:[#allocation8 + $0x2a0] sm:$0xf0] }
 0x38d   :  { %v3776_v48 = vor.u32 %v4193_v41, %v3775_v37  ;;  %v4185_v53 = vld [vmem:[#allocation8 + $0x29c] sm:$0xf0]  ;;  %v3748_v59 = vor.u32 %v4181_v54, %v3745_v55  ;;  %v4162_v37 = vld [vmem:[#allocation8 + $0x1e4] sm:$0xf0]  ;;  %v4158_v41 = vld [vmem:[#allocation8 + $0x1cc] sm:$0xf] }
 0x38e   :  { %v1508_v57 = vpack.c.bf16 %v1507_v56, %v1507_v56  ;;  %v3520_v56 = vor.u32 %v4129_v26, %v3519_v38  ;;  %v3744_v58 = vor.u32 %v4185_v53, %v3743_v52  ;;  %v3656_v42 = vor.u32 %v4162_v37, %v3655_v46  ;;  %v4210_v38 = vld [vmem:[#allocation8 + $0x364] sm:$0xf0]  ;;  %v4150_v53 = vld [vmem:[#allocation8 + $0x18c] sm:$0xf] }
 0x38f   :  { %2482 = vmatpush.bf16.msrb.mxu2 %v3776_v48  ;;  %2509 = vmatpush.bf16.msra.mxu0 %v3748_v59  ;;  %v3660_v33 = vor.u32 %v4158_v41, %v3657_v18  ;;  %v4206_v48 = vld [vmem:[#allocation8 + $0x34c] sm:$0xf]  ;;  %v3848_v26 = vor.u32 %v4210_v38, %v3847_v25  ;;  %v4154_v52 = vld [vmem:[#allocation8 + $0x1a4] sm:$0xf0] }
 0x390   :  { %1619 = vmatmul.bf16.vlgmr.msrb.gmra.mxu3 %v1508_v57  ;;  %1632 = vmatmul.bf16.vlgmr.msrb.gmra.mxu0 %v1508_v57  ;;  %v3524_v57 = vor.u32 %v4125_v49, %v3521_v50  ;;  %v3849_v49 = vld [vmem:[#allocation8 + $0x368] sm:$0xf0]  ;;  %v3624_v54 = vor.u32 %v4154_v52, %v3623_v51  ;;  %v4122_v46 = vld [vmem:[#allocation8 + $0xa4] sm:$0xf0] }
 0x391   :  { %2469 = vmatpush.bf16.msrb.mxu1 %v3520_v56  ;;  %v3852_v50 = vor.u32 %v4206_v48, %v3849_v49  ;;  %v3625_v55 = vld [vmem:[#allocation8 + $0x1a8] sm:$0xf0]  ;;  %v3496_v37 = vor.u32 %v4122_v46, %v3495_v45  ;;  %v4170_v25 = vld [vmem:[#allocation8 + $0x224] sm:$0xf0]  ;;  %v4215_v45 = vld [vmem:[#allocation8 + $0x394] sm:$0xf] }
 0x392   :  { %2495 = vmatpush.bf16.msra.mxu3 %v3524_v57  ;;  %v3628_v56 = vor.u32 %v4150_v53, %v3625_v55  ;;  %v3815_v57 = vld [vmem:[#allocation8 + $0x308] sm:$0xf]  ;;  %v4198_v59 = vld [vmem:[#allocation8 + $0x30c] sm:$0xf]  ;;  %v3889_v46 = vld [vmem:[#allocation8 + $0x3b0] sm:$0xf0] }
 0x393   :  { %2483 = vmatpush.bf16.msrb.mxu2 %v3744_v58  ;;  %2510 = vmatpush.bf16.msra.mxu0 %v3716_v2  ;;  %v4202_v58 = vld [vmem:[#allocation8 + $0x324] sm:$0xf0]  ;;  %v3820_v62 = vor.u32 %v4198_v59, %v3817_v61  ;;  %v3497_v41 = vld [vmem:[#allocation8 + $0xa8] sm:$0xf0] }
 0x394   :  { %v4166_v38 = vld [vmem:[#allocation8 + $0x20c] sm:$0xf]  ;;  %v3463_v52 = vld [vmem:[#allocation8 + $0x48] sm:$0xf] }
 0x395   :  { %2470 = vmatpush.bf16.msrb.mxu1 %v3488_v6  ;;  %v4194_v6 = vld [vmem:[#allocation8 + $0x2e4] sm:$0xf0]  ;;  %v3689_v49 = vld [vmem:[#allocation8 + $0x228] sm:$0xf0] }
 0x396   :  { %2496 = vmatpush.bf16.msra.mxu3 %v3492_v8  ;;  %v3784_v8 = vor.u32 %v4194_v6, %v3783_v5  ;;  %v3692_v51 = vor.u32 %v4166_v38, %v3689_v49  ;;  %v4110_v55 = vld [vmem:[#allocation8 + $0x4c] sm:$0xf]  ;;  %v4106_v61 = vld [vmem:[#allocation8 + $0x24] sm:$0xf0] }
 0x397   :  { %2484 = vmatpush.bf16.msrb.mxu2 %v3712_v0  ;;  %2511 = vmatpush.bf16.msra.mxu0 %v3684_v16  ;;  %v4146_v0 = vld [vmem:[#allocation8 + $0x164] sm:$0xf0]  ;;  %v3564_v16 = vor.u32 %v4134_v13, %v3561_v15 }
 0x398   :  { %v3592_v2 = vor.u32 %v4146_v0, %v3591_v63  ;;  %v4102_v0 = vld [vmem:[#allocation8 + $0xc] sm:$0xf] }
 0x399   :  { %2471 = vmatpush.bf16.msrb.mxu1 %v3456_v28  ;;  %v3527_v28 = vld [vmem:[#allocation8 + $0xc8] sm:$0xf]  ;;  %v3436_v3 = vor.u32 %v4102_v0, %v3433_v1  ;;  %v4199_v0 = vld [vmem:[#allocation8 + $0x314] sm:$0xf] }
 0x39a   :  { %2497 = vmatpush.bf16.msra.mxu3 %v3460_v30  ;;  %v4126_v30 = vld [vmem:[#allocation8 + $0xcc] sm:$0xf]  ;;  %v3528_v31 = vor.u32 %v4130_v29, %v3527_v28  ;;  %v4223_v28 = vld [vmem:[#allocation8 + $0x3d4] sm:$0xf] }
 0x39b   :  { %2485 = vmatpush.bf16.msrb.mxu2 %v3680_v12  ;;  %2556 = vmatpush.bf16.msrb.mxu0 %v3916_v23  ;;  %v4138_v12 = vld [vmem:[#allocation8 + $0x124] sm:$0xf0]  ;;  %v3532_v34 = vor.u32 %v4126_v30, %v3529_v32  ;;  %v3921_v29 = vld [vmem:[#allocation8 + $0x3f0] sm:$0xf0] }
 0x39c   :  { %v3560_v14 = vor.u32 %v4138_v12, %v3559_v11  ;;  %v3825_v1 = vld [vmem:[#allocation8 + $0x330] sm:$0xf0] }
 0x39d   :  { %2472 = vmatpush.bf16.msrb.mxu1 %v3424_v43  ;;  %v3721_v43 = vld [vmem:[#allocation8 + $0x268] sm:$0xf0] }
 0x39e   :  { %2498 = vmatpush.bf16.msra.mxu3 %v3428_v47  ;;  %v3724_v44 = vor.u32 %v4174_v39, %v3721_v43  ;;  %v4118_v47 = vld [vmem:[#allocation8 + $0x8c] sm:$0xf]  ;;  %v3924_v39 = vor.u32 %v4223_v28, %v3921_v29  ;;  %v4183_v28 = vld [vmem:[#allocation8 + $0x294] sm:$0xf] }
 0x39f   :  { %2530 = vmatpush.bf16.msra.mxu2 %v3912_v19  ;;  %2557 = vmatpush.bf16.msrb.mxu0 %v3884_v17  ;;  %v3751_v19 = vld [vmem:[#allocation8 + $0x288] sm:$0xf]  ;;  %v3761_v29 = vld [vmem:[#allocation8 + $0x2b0] sm:$0xf0] }
 0x3a0   :  { %v3752_v23 = vor.u32 %v4186_v20, %v3751_v19 }
 0x3a1   :  { %2517 = vmatpush.bf16.msra.mxu1 %v3656_v42  ;;  %v3500_v42 = vor.u32 %v4118_v47, %v3497_v41  ;;  %v4163_v41 = vld [vmem:[#allocation8 + $0x1ec] sm:$0xf0] }
 0x3a2   :  { %2543 = vmatpush.bf16.msrb.mxu3 %v3660_v33  ;;  %v3687_v33 = vld [vmem:[#allocation8 + $0x208] sm:$0xf] }
 0x3a3   :  { %2531 = vmatpush.bf16.msra.mxu2 %v3880_v35  ;;  %2558 = vmatpush.bf16.msrb.mxu0 %v3852_v50  ;;  %v3719_v35 = vld [vmem:[#allocation8 + $0x248] sm:$0xf]  ;;  %v1527_v50 = vperm.slane %v1525_v22, 0  ;;  %v3919_v22 = vld [vmem:[#allocation8 + $0x3d0] sm:$0xf] }
 0x3a4   :  { %v3720_v17 = vor.u32 %v4178_v36, %v3719_v35 }
 0x3a5   :  { %2518 = vmatpush.bf16.msra.mxu1 %v3624_v54  ;;  %v4114_v54 = vld [vmem:[#allocation8 + $0x64] sm:$0xf0] }
 0x3a6   :  { %2544 = vmatpush.bf16.msrb.mxu3 %v3628_v56  ;;  %v3464_v56 = vor.u32 %v4114_v54, %v3463_v52  ;;  %v3857_v52 = vld [vmem:[#allocation8 + $0x370] sm:$0xf0] }
 0x3a7   :  { %2532 = vmatpush.bf16.msra.mxu2 %v3848_v26  ;;  %2559 = vmatpush.bf16.msrb.mxu0 %v3820_v62  ;;  %v3688_v26 = vor.u32 %v4170_v25, %v3687_v33  ;;  %v3665_v33 = vld [vmem:[#allocation8 + $0x1f0] sm:$0xf0] }
 0x3a9   :  { %2519 = vmatpush.bf16.msra.mxu1 %v3592_v2 }
 0x3aa   :  { %2545 = vmatpush.bf16.msrb.mxu3 %v3596_v4 }
 0x3ab   :  { %2560 = vmatpush.bf16.msrb.mxu0 %v3788_v10 }
 0x3ad   :  { %2520 = vmatpush.bf16.msra.mxu1 %v3560_v14 }
 0x3ae   :  { %2546 = vmatpush.bf16.msrb.mxu3 %v3564_v16 }
 0x3af   :  { %2561 = vmatpush.bf16.msrb.mxu0 %v3756_v27 }
 0x3b1   :  { %2521 = vmatpush.bf16.msra.mxu1 %v3528_v31 }
 0x3b2   :  { %2547 = vmatpush.bf16.msrb.mxu3 %v3532_v34 }
 0x3b3   :  { %2562 = vmatpush.bf16.msrb.mxu0 %v3724_v44  ;;  %v4219_v44 = vld [vmem:[#allocation8 + $0x3ac] sm:$0xf0] }
 0x3b5   :  { %2522 = vmatpush.bf16.msra.mxu1 %v3496_v37  ;;  %v3663_v37 = vld [vmem:[#allocation8 + $0x1d0] sm:$0xf] }
 0x3b6   :  { %2548 = vmatpush.bf16.msrb.mxu3 %v3500_v42  ;;  %v4159_v42 = vld [vmem:[#allocation8 + $0x1d4] sm:$0xf] }
 0x3b7   :  { %2563 = vmatpush.bf16.msrb.mxu0 %v3692_v51  ;;  %v4207_v51 = vld [vmem:[#allocation8 + $0x354] sm:$0xf]  ;;  %v3668_v54 = vor.u32 %v4159_v42, %v3665_v33 }
 0x3b8   :  { %v4119_v42 = vld [vmem:[#allocation8 + $0x94] sm:$0xf] }
 0x3b9   :  { %2523 = vmatpush.bf16.msra.mxu1 %v3464_v56  ;;  %v3505_v33 = vld [vmem:[#allocation8 + $0xb0] sm:$0xf0] }
 0x3ca   :  { %v1448_v60 = vpop.xlane.xlu2 %1447 }
 0x3cb   :  { %1449 = vst [vmem:[#allocation11] sm:$0x3] %v1448_v60  ;;  %v3816_v60 = vor.u32 %v4202_v58, %v3815_v57  ;;  %v3465_v57 = vld [vmem:[#allocation8 + $0x68] sm:$0xf0] }
 0x3cc   :  { %v3468_v58 = vor.u32 %v4110_v55, %v3465_v57  ;;  %v3631_v55 = vld [vmem:[#allocation8 + $0x190] sm:$0xf]  ;;  %2728 = dma.vmem_to_hbm [thread:$0]  %s2724_s4, 32, %s2726_s19, [#allocation12]  }
 0x3cd   :  { %2533 = vmatpush.bf16.msra.mxu2 %v3816_v60  ;;  %v3431_v60 = vld [vmem:[#allocation8 + $0x8] sm:$0xf]  ;;  %v4155_v57 = vld [vmem:[#allocation8 + $0x1ac] sm:$0xf0] }
 0x3ce   :  { %2549 = vmatpush.bf16.msrb.mxu3 %v3468_v58  ;;  %v3432_v63 = vor.u32 %v4106_v61, %v3431_v60  ;;  %v4151_v58 = vld [vmem:[#allocation8 + $0x194] sm:$0xf]  ;;  %v3860_v61 = vor.u32 %v4207_v51, %v3857_v52  ;;  %v3927_v51 = vld [vmem:[#allocation8 + $0x3d8] sm:$0xf] }
 0x3cf   :  { %v4228_v52 = vld [vmem:[#allocation8 + $0x3f4] sm:$0xf0] }
 0x3d0   :  { %2524 = vmatpush.bf16.msra.mxu1 %v3432_v63  ;;  %v3823_v63 = vld [vmem:[#allocation8 + $0x310] sm:$0xf] }
 0x3d1   :  { %2534 = vmatpush.bf16.msra.mxu2 %v3784_v8 }
 0x3d2   :  { %2550 = vmatpush.bf16.msrb.mxu3 %v3436_v3 }
 0x3d5   :  { %2535 = vmatpush.bf16.msra.mxu2 %v3752_v23  ;;  %v4227_v23 = vld [vmem:[#allocation8 + $0x3ec] sm:$0xf0] }
 0x3d6   :  { %v3920_v36 = vor.u32 %v4227_v23, %v3919_v22 }
 0x3d9   :  { %2536 = vmatpush.bf16.msra.mxu2 %v3720_v17 }
 0x3dd   :  { %2537 = vmatpush.bf16.msra.mxu2 %v3688_v26  ;;  %v3855_v26 = vld [vmem:[#allocation8 + $0x350] sm:$0xf] }
 0x40d   :  { %v1633_v18 = vpop.f32.mrf.mxu0 }
 0x40e   :  { %v1634_v48 = vadd.f32 %v1633_v18, %v1528_v40  ;;  %v3887_v40 = vld [vmem:[#allocation8 + $0x390] sm:$0xf] }
 0x40f   :  { %v3888_v38 = vor.u32 %v4219_v44, %v3887_v40  ;;  %v3764_v40 = vor.u32 %v4183_v28, %v3761_v29  ;;  %v4179_v44 = vld [vmem:[#allocation8 + $0x26c] sm:$0xf0] }
 0x410   :  { %v3420_v53 = vmul.f32 -1.442695, %v1634_v48 }
 0x412   :  { %4263 = vpow2.f32 %v3420_v53  ;;  %v3664_v53 = vor.u32 %v4163_v41, %v3663_v37  ;;  %v3503_v41 = vld [vmem:[#allocation8 + $0x90] sm:$0xf] }
 0x413   :  { %v1620_v59 = vpop.f32.mrf.mxu3 }
 0x414   :  { %v4638_v62 = vadd.f32 %v1620_v59, %v1527_v50  ;;  %v4211_v50 = vld [vmem:[#allocation8 + $0x36c] sm:$0xf0]  ;;  %v3633_v59 = vld [vmem:[#allocation8 + $0x1b0] sm:$0xf0] }
 0x415   :  { %v1635_v2 = vpop.f32.mrf.mxu0  ;;  %v3856_v60 = vor.u32 %v4211_v50, %v3855_v26  ;;  %v3636_v3 = vor.u32 %v4151_v58, %v3633_v59  ;;  %v4171_v26 = vld [vmem:[#allocation8 + $0x22c] sm:$0xf0]  ;;  %v3697_v50 = vld [vmem:[#allocation8 + $0x230] sm:$0xf0] }
 0x416   :  { %v3419_v4 = vmul.f32 -1.442695, %v4638_v62  ;;  %v3632_v2 = vor.u32 %v4155_v57, %v3631_v55  ;;  %v4224_v55 = vld [vmem:[#allocation8 + $0x3dc] sm:$0xf]  ;;  %v3471_v58 = vld [vmem:[#allocation8 + $0x50] sm:$0xf] }
 0x417   :  { %v3929_v57 = vld [vmem:[#allocation8 + $0x3f8] sm:$0xf0]  ;;  %v4115_v59 = vld [vmem:[#allocation8 + $0x6c] sm:$0xf0] }
 0x418   :  { %v4264_v5 = vpop.eup %4263  ;;  %4265 = vpow2.f32 %v3419_v4  ;;  %v3599_v4 = vld [vmem:[#allocation8 + $0x150] sm:$0xf] }
 0x419   :  { %v1644_v6 = vadd.f32 1.0, %v4264_v5  ;;  %v4147_v5 = vld [vmem:[#allocation8 + $0x16c] sm:$0xf0] }
 0x41b   :  { %4267 = vrcp.f32 %v1644_v6  ;;  %v1622_v7 = vpop.f32.mrf.mxu3  ;;  %v1671_v13 = vand.u32 2147483648, %v1644_v6  ;;  %v1669_v15 = vand.u32 2147483647, %v1644_v6  ;;  %vm1665_vm4 = vweird.f32 %v1644_v6 }
 0x41c   :  { %v3601_v7 = vld [vmem:[#allocation8 + $0x170] sm:$0xf0] }
 0x41d   :  { %v1672_v21 = vor.u32 1.1754944e-38, %v1671_v13  ;;  %vm1670_vm6 = vcmp.eq.f32.partialorder %v1669_v15, 8.507059e+37  ;;  %v3793_v13 = vld [vmem:[#allocation8 + $0x2f0] sm:$0xf0] }
 0x41e   :  { %v4266_v8 = vpop.eup %4265 }
 0x41f   :  { %v1643_v9 = vadd.f32 1.0, %v4266_v8 }
 0x421   :  { %v4268_v10 = vpop.eup %4267  ;;  %4269 = vrcp.f32 %v1643_v9  ;;  %v1656_v31 = vand.u32 2147483648, %v1643_v9  ;;  %v1654_v35 = vand.u32 2147483647, %v1643_v9  ;;  %vm1650_vm8 = vweird.f32 %v1643_v9 }
 0x422   :  { %v1661_v11 = vmul.f32 %v4268_v10, %v1644_v6  ;;  %vm1666_vm3 = vweird.f32 %v4268_v10  ;;  %v4143_v6 = vld [vmem:[#allocation8 + $0x154] sm:$0xf] }
 0x423   :  { %vm1667_vm5 = vmor %vm1665_vm4, %vm1666_vm3  ;;  %v1657_v47 = vor.u32 1.1754944e-38, %v1656_v31  ;;  %vm1655_vm10 = vcmp.eq.f32.partialorder %v1654_v35, 8.507059e+37  ;;  %v3604_v15 = vor.u32 %v4143_v6, %v3601_v7  ;;  %v4127_v35 = vld [vmem:[#allocation8 + $0xd4] sm:$0xf]  ;;  %v3897_v7 = vld [vmem:[#allocation8 + $0x3b8] sm:$0xf0] }
 0x424   :  { %v1662_v12 = vsub.f32 1.0, %v1661_v11  ;;  %v4195_v11 = vld [vmem:[#allocation8 + $0x2ec] sm:$0xf0] }
 0x426   :  { %v1663_v14 = vmul.f32 %v4268_v10, %v1662_v12  ;;  %v4191_v12 = vld [vmem:[#allocation8 + $0x2d4] sm:$0xf] }
 0x427   :  { %v4270_v16 = vpop.eup %4269  ;;  %v3796_v23 = vor.u32 %v4191_v12, %v3793_v13  ;;  %v3671_v12 = vld [vmem:[#allocation8 + $0x1d8] sm:$0xf] }
 0x428   :  { %v1664_v19 = vadd.f32 %v4268_v10, %v1663_v14  ;;  %v1646_v20 = vmul.f32 %v4270_v16, %v1643_v9  ;;  %vm1651_vm7 = vweird.f32 %v4270_v16  ;;  %v3828_v9 = vor.u32 %v4199_v0, %v3825_v1  ;;  %v4164_v13 = vld [vmem:[#allocation8 + $0x1f4] sm:$0xf0] }
 0x429   :  { %vm1652_vm9 = vmor %vm1650_vm8, %vm1651_vm7  ;;  %v3600_v14 = vor.u32 %v4147_v5, %v3599_v4  ;;  %v3928_v0 = vor.u32 %v4228_v52, %v3927_v51  ;;  %v3932_v1 = vor.u32 %v4224_v55, %v3929_v57  ;;  %v4216_v4 = vld [vmem:[#allocation8 + $0x39c] sm:$0xf]  ;;  %v3472_v5 = vor.u32 %v4115_v59, %v3471_v58  ;;  %v3575_v51 = vld [vmem:[#allocation8 + $0x118] sm:$0xf] }
 0x42a   :  { %v1668_v24 = vsel %vm1667_vm5, %v4268_v10, %v1664_v19  ;;  %v1647_v27 = vsub.f32 1.0, %v1646_v20  ;;  %v3791_v10 = vld [vmem:[#allocation8 + $0x2d0] sm:$0xf]  ;;  %v4135_v20 = vld [vmem:[#allocation8 + $0x114] sm:$0xf]  ;;  %v3672_v28 = vor.u32 %v4164_v13, %v3671_v12 }
 0x42b   :  { %v1673_v30 = vsel %vm1670_vm6, %v1672_v21, %v1668_v24  ;;  %v4139_v19 = vld [vmem:[#allocation8 + $0x12c] sm:$0xf0]  ;;  %v3569_v21 = vld [vmem:[#allocation8 + $0x130] sm:$0xf0]  ;;  %v3792_v22 = vor.u32 %v4195_v11, %v3791_v10  ;;  %v4140_v52 = vld [vmem:[#allocation8 + $0x134] sm:$0xf0] }
 0x42c   :  { %v1676_v32 = vmul.f32 %v1673_v30, %v1634_v48  ;;  %v1648_v34 = vmul.f32 %v4270_v16, %v1647_v27  ;;  %v3892_v48 = vor.u32 %v4215_v45, %v3889_v46  ;;  %v3759_v24 = vld [vmem:[#allocation8 + $0x290] sm:$0xf]  ;;  %v3572_v31 = vor.u32 %v4135_v20, %v3569_v21  ;;  %v4175_v45 = vld [vmem:[#allocation8 + $0x254] sm:$0xf]  ;;  %v3863_v20 = vld [vmem:[#allocation8 + $0x358] sm:$0xf] }
 0x42d   :  { %v4187_v27 = vld [vmem:[#allocation8 + $0x2ac] sm:$0xf0]  ;;  %v3729_v46 = vld [vmem:[#allocation8 + $0x270] sm:$0xf0]  ;;  %v3767_v58 = vld [vmem:[#allocation8 + $0x298] sm:$0xf] }
 0x42e   :  { %v4641_v17 = vpack.c.bf16 %v1676_v32, %v1676_v32  ;;  %v1649_v43 = vadd.f32 %v4270_v16, %v1648_v34  ;;  %v3535_v32 = vld [vmem:[#allocation8 + $0xd0] sm:$0xf]  ;;  %v4103_v10 = vld [vmem:[#allocation8 + $0x14] sm:$0xf]  ;;  %v4188_v59 = vld [vmem:[#allocation8 + $0x2b4] sm:$0xf0] }
 0x42f   :  { %v4131_v34 = vld [vmem:[#allocation8 + $0xec] sm:$0xf0]  ;;  %v3441_v11 = vld [vmem:[#allocation8 + $0x30] sm:$0xf0]  ;;  %v3511_v12 = vld [vmem:[#allocation8 + $0x98] sm:$0xf] }
 0x430   :  { %v1653_v18 = vsel %vm1652_vm9, %v4270_v16, %v1649_v43  ;;  %2486 = vmatmul.bf16.vlgmr.msrb.gmra.mxu2 %v4641_v17  ;;  %2512 = vmatmul.bf16.vlgmr.msra.gmra.mxu0 %v4641_v17  ;;  %v3567_v16 = vld [vmem:[#allocation8 + $0x110] sm:$0xf]  ;;  %v4124_v13 = vld [vmem:[#allocation8 + $0xb4] sm:$0xf0] }
 0x431   :  { %v1658_v25 = vsel %vm1655_vm10, %v1657_v47, %v1653_v18  ;;  %2582 = vmatpush.bf16.msrb.mxu2 %v3920_v36  ;;  %2608 = vmatpush.bf16.msra.mxu0 %v3924_v39  ;;  %v3568_v30 = vor.u32 %v4139_v19, %v3567_v16  ;;  %v3537_v36 = vld [vmem:[#allocation8 + $0xf0] sm:$0xf0]  ;;  %v3760_v39 = vor.u32 %v4187_v27, %v3759_v24  ;;  %v3727_v43 = vld [vmem:[#allocation8 + $0x250] sm:$0xf]  ;;  %v4208_v24 = vld [vmem:[#allocation8 + $0x35c] sm:$0xf] }
 0x432   :  { %v1675_v49 = vmul.f32 %v1658_v25, %v4638_v62  ;;  %v4203_v62 = vld [vmem:[#allocation8 + $0x32c] sm:$0xf0]  ;;  %v3536_v47 = vor.u32 %v4131_v34, %v3535_v32  ;;  %v3540_v37 = vor.u32 %v4127_v35, %v3537_v36  ;;  %v3728_v25 = vor.u32 %v4179_v44, %v3727_v43  ;;  %v3865_v27 = vld [vmem:[#allocation8 + $0x378] sm:$0xf0] }
 0x433   :  { %v3824_v8 = vor.u32 %v4203_v62, %v3823_v63  ;;  %v4123_v18 = vld [vmem:[#allocation8 + $0xac] sm:$0xf0]  ;;  %v3900_v19 = vor.u32 %v4216_v4, %v3897_v7  ;;  %v4152_v32 = vld [vmem:[#allocation8 + $0x19c] sm:$0xf]  ;;  %v3868_v36 = vor.u32 %v4208_v24, %v3865_v27  ;;  %v3768_v4 = vor.u32 %v4188_v59, %v3767_v58  ;;  %v4180_v7 = vld [vmem:[#allocation8 + $0x274] sm:$0xf0] }
 0x434   :  { %v4646_v56 = vpack.c.bf16 %v1675_v49, %v1675_v49  ;;  %v4167_v49 = vld [vmem:[#allocation8 + $0x214] sm:$0xf]  ;;  %v3641_v34 = vld [vmem:[#allocation8 + $0x1b8] sm:$0xf0]  ;;  %v3512_v24 = vor.u32 %v4124_v13, %v3511_v12 }
 0x435   :  { %2583 = vmatpush.bf16.msrb.mxu2 %v3888_v38  ;;  %2609 = vmatpush.bf16.msra.mxu0 %v3892_v48  ;;  %v3732_v38 = vor.u32 %v4175_v45, %v3729_v46  ;;  %v3695_v48 = vld [vmem:[#allocation8 + $0x210] sm:$0xf]  ;;  %v3700_v62 = vor.u32 %v4167_v49, %v3697_v50  ;;  %v4200_v43 = vld [vmem:[#allocation8 + $0x31c] sm:$0xf]  ;;  %v3644_v46 = vor.u32 %v4152_v32, %v3641_v34 }
 0x436   :  { %2473 = vmatmul.bf16.vlgmr.msrb.gmra.mxu1 %v4646_v56  ;;  %2499 = vmatmul.bf16.vlgmr.msra.gmra.mxu3 %v4646_v56  ;;  %v3696_v63 = vor.u32 %v4171_v26, %v3695_v48  ;;  %v3833_v44 = vld [vmem:[#allocation8 + $0x338] sm:$0xf0] }
 0x437   :  { %2569 = vmatpush.bf16.msrb.mxu1 %v3664_v53  ;;  %2595 = vmatpush.bf16.msra.mxu3 %v3668_v54  ;;  %v3504_v53 = vor.u32 %v4123_v18, %v3503_v41  ;;  %v3508_v54 = vor.u32 %v4119_v42, %v3505_v33  ;;  %v4144_v41 = vld [vmem:[#allocation8 + $0x15c] sm:$0xf]  ;;  %v3836_v33 = vor.u32 %v4200_v43, %v3833_v44 }
 0x438   :  { %v3609_v18 = vld [vmem:[#allocation8 + $0x178] sm:$0xf0] }
 0x439   :  { %2584 = vmatpush.bf16.msrb.mxu2 %v3856_v60  ;;  %2610 = vmatpush.bf16.msra.mxu0 %v3860_v61  ;;  %v4111_v60 = vld [vmem:[#allocation8 + $0x54] sm:$0xf]  ;;  %v4192_v48 = vld [vmem:[#allocation8 + $0x2dc] sm:$0xf]  ;;  %v3612_v50 = vor.u32 %v4144_v41, %v3609_v18 }
 0x43a   :  { %v3473_v61 = vld [vmem:[#allocation8 + $0x70] sm:$0xf0]  ;;  %v3801_v26 = vld [vmem:[#allocation8 + $0x2f8] sm:$0xf0] }
 0x43b   :  { %2570 = vmatpush.bf16.msrb.mxu1 %v3632_v2  ;;  %2596 = vmatpush.bf16.msra.mxu3 %v3636_v3  ;;  %v3895_v2 = vld [vmem:[#allocation8 + $0x398] sm:$0xf]  ;;  %v3476_v6 = vor.u32 %v4111_v60, %v3473_v61  ;;  %v3804_v57 = vor.u32 %v4192_v48, %v3801_v26  ;;  %v4184_v60 = vld [vmem:[#allocation8 + $0x29c] sm:$0xf] }
 0x43c   :  { %v4220_v3 = vld [vmem:[#allocation8 + $0x3b4] sm:$0xf0]  ;;  %v3769_v61 = vld [vmem:[#allocation8 + $0x2b8] sm:$0xf0] }
 0x43d   :  { %2585 = vmatpush.bf16.msrb.mxu2 %v3824_v8  ;;  %2611 = vmatpush.bf16.msra.mxu0 %v3828_v9  ;;  %v3439_v8 = vld [vmem:[#allocation8 + $0x10] sm:$0xf]  ;;  %v3896_v16 = vor.u32 %v4220_v3, %v3895_v2  ;;  %v4128_v2 = vld [vmem:[#allocation8 + $0xdc] sm:$0xf] }
 0x43e   :  { %v4107_v9 = vld [vmem:[#allocation8 + $0x2c] sm:$0xf0]  ;;  %v3545_v3 = vld [vmem:[#allocation8 + $0xf8] sm:$0xf0] }
 0x43f   :  { %2571 = vmatpush.bf16.msrb.mxu1 %v3600_v14  ;;  %2597 = vmatpush.bf16.msra.mxu3 %v3604_v15  ;;  %v4160_v14 = vld [vmem:[#allocation8 + $0x1dc] sm:$0xf]  ;;  %v3440_v21 = vor.u32 %v4107_v9, %v3439_v8 }
 0x440   :  { %2538 = vmatmul.bf16.vlgmr.msra.gmra.mxu2 %v4641_v17  ;;  %2564 = vmatmul.bf16.vlgmr.msrb.gmra.mxu0 %v4641_v17  ;;  %v3673_v15 = vld [vmem:[#allocation8 + $0x1f8] sm:$0xf0] }
 0x441   :  { %2586 = vmatpush.bf16.msrb.mxu2 %v3792_v22  ;;  %2612 = vmatpush.bf16.msra.mxu0 %v3796_v23  ;;  %v3444_v22 = vor.u32 %v4103_v10, %v3441_v11  ;;  %v4212_v23 = vld [vmem:[#allocation8 + $0x374] sm:$0xf0]  ;;  %v3676_v29 = vor.u32 %v4160_v14, %v3673_v15  ;;  %v4176_v8 = vld [vmem:[#allocation8 + $0x25c] sm:$0xf]  ;;  %v3548_v11 = vor.u32 %v4128_v2, %v3545_v3 }
 0x442   :  { %v3864_v35 = vor.u32 %v4212_v23, %v3863_v20  ;;  %v3737_v9 = vld [vmem:[#allocation8 + $0x278] sm:$0xf0]  ;;  %v3703_v20 = vld [vmem:[#allocation8 + $0x218] sm:$0xf] }
 0x443   :  { %2572 = vmatpush.bf16.msrb.mxu1 %v3568_v30  ;;  %2598 = vmatpush.bf16.msra.mxu3 %v3572_v31  ;;  %v3639_v30 = vld [vmem:[#allocation8 + $0x198] sm:$0xf]  ;;  %v4120_v14 = vld [vmem:[#allocation8 + $0x9c] sm:$0xf] }
 0x444   :  { %v4156_v31 = vld [vmem:[#allocation8 + $0x1b4] sm:$0xf0]  ;;  %v3513_v15 = vld [vmem:[#allocation8 + $0xb8] sm:$0xf0] }
 0x445   :  { %2587 = vmatpush.bf16.msrb.mxu2 %v3760_v39  ;;  %2613 = vmatpush.bf16.msra.mxu0 %v3764_v40  ;;  %v3831_v39 = vld [vmem:[#allocation8 + $0x318] sm:$0xf]  ;;  %v3640_v45 = vor.u32 %v4156_v31, %v3639_v30  ;;  %v3705_v23 = vld [vmem:[#allocation8 + $0x238] sm:$0xf0]  ;;  %v3516_v27 = vor.u32 %v4120_v14, %v3513_v15 }
 0x446   :  { %2525 = vmatmul.bf16.vlgmr.msra.gmra.mxu1 %v4646_v56  ;;  %2551 = vmatmul.bf16.vlgmr.msrb.gmra.mxu3 %v4646_v56  ;;  %v4204_v40 = vld [vmem:[#allocation8 + $0x334] sm:$0xf0]  ;;  %v4112_v30 = vld [vmem:[#allocation8 + $0x5c] sm:$0xf] }
 0x447   :  { %2573 = vmatpush.bf16.msrb.mxu1 %v3536_v47  ;;  %2599 = vmatpush.bf16.msra.mxu3 %v3540_v37  ;;  %v3607_v47 = vld [vmem:[#allocation8 + $0x158] sm:$0xf]  ;;  %v3832_v42 = vor.u32 %v4204_v40, %v3831_v39  ;;  %v3481_v31 = vld [vmem:[#allocation8 + $0x78] sm:$0xf0] }
 0x448   :  { %v4148_v37 = vld [vmem:[#allocation8 + $0x174] sm:$0xf0]  ;;  %v4104_v43 = vld [vmem:[#allocation8 + $0x1c] sm:$0xf] }
 0x449   :  { %2588 = vmatpush.bf16.msrb.mxu2 %v3728_v25  ;;  %2614 = vmatpush.bf16.msra.mxu0 %v3732_v38  ;;  %v3799_v25 = vld [vmem:[#allocation8 + $0x2d8] sm:$0xf]  ;;  %v3608_v49 = vor.u32 %v4148_v37, %v3607_v47  ;;  %v3449_v44 = vld [vmem:[#allocation8 + $0x38] sm:$0xf0] }
 0x44a   :  { %v4196_v38 = vld [vmem:[#allocation8 + $0x2f4] sm:$0xf0] }
 0x44b   :  { %2574 = vmatpush.bf16.msrb.mxu1 %v3504_v53  ;;  %2600 = vmatpush.bf16.msra.mxu3 %v3508_v54  ;;  %v4136_v53 = vld [vmem:[#allocation8 + $0x11c] sm:$0xf]  ;;  %v3800_v55 = vor.u32 %v4196_v38, %v3799_v25  ;;  %v3447_v39 = vld [vmem:[#allocation8 + $0x18] sm:$0xf] }
 0x44c   :  { %v3577_v54 = vld [vmem:[#allocation8 + $0x138] sm:$0xf0]  ;;  %v4108_v40 = vld [vmem:[#allocation8 + $0x34] sm:$0xf0] }
 0x44d   :  { %2589 = vmatpush.bf16.msrb.mxu2 %v3696_v63  ;;  %2615 = vmatpush.bf16.msra.mxu0 %v3700_v62  ;;  %v3576_v63 = vor.u32 %v4140_v52, %v3575_v51  ;;  %v3580_v62 = vor.u32 %v4136_v53, %v3577_v54 }
 0x44f   :  { %2575 = vmatpush.bf16.msrb.mxu1 %v3472_v5  ;;  %2601 = vmatpush.bf16.msra.mxu3 %v3476_v6  ;;  %v3772_v5 = vor.u32 %v4184_v60, %v3769_v61  ;;  %v3735_v6 = vld [vmem:[#allocation8 + $0x258] sm:$0xf] }
 0x450   :  { %2590 = vmatmul.bf16.vlgmr.msrb.gmra.mxu2 %v4641_v17  ;;  %2616 = vmatmul.bf16.vlgmr.msra.gmra.mxu0 %v4641_v17 }
 0x451   :  { %2634 = vmatpush.bf16.msra.mxu2 %v3928_v0  ;;  %2660 = vmatpush.bf16.msrb.mxu0 %v3932_v1  ;;  %v3543_v0 = vld [vmem:[#allocation8 + $0xd8] sm:$0xf] }
 0x452   :  { %v4132_v1 = vld [vmem:[#allocation8 + $0xf4] sm:$0xf0] }
 0x453   :  { %2576 = vmatpush.bf16.msrb.mxu1 %v3440_v21  ;;  %2602 = vmatpush.bf16.msra.mxu3 %v3444_v22  ;;  %v3544_v10 = vor.u32 %v4132_v1, %v3543_v0  ;;  %v4172_v21 = vld [vmem:[#allocation8 + $0x234] sm:$0xf0]  ;;  %v4168_v22 = vld [vmem:[#allocation8 + $0x21c] sm:$0xf] }
 0x454   :  { %v3704_v32 = vor.u32 %v4172_v21, %v3703_v20  ;;  %v3708_v34 = vor.u32 %v4168_v22, %v3705_v23 }
 0x455   :  { %2635 = vmatpush.bf16.msra.mxu2 %v3896_v16  ;;  %2661 = vmatpush.bf16.msrb.mxu0 %v3900_v19  ;;  %v3736_v16 = vor.u32 %v4180_v7, %v3735_v6  ;;  %v3740_v19 = vor.u32 %v4176_v8, %v3737_v9 }
 0x456   :  { %2577 = vmatmul.bf16.vlgmr.msrb.gmra.mxu1 %v4646_v56  ;;  %2603 = vmatmul.bf16.vlgmr.msra.gmra.mxu3 %v4646_v56 }
 0x457   :  { %2621 = vmatpush.bf16.msra.mxu1 %v3672_v28  ;;  %2647 = vmatpush.bf16.msrb.mxu3 %v3676_v29  ;;  %v3479_v28 = vld [vmem:[#allocation8 + $0x58] sm:$0xf] }
 0x458   :  { %v4116_v29 = vld [vmem:[#allocation8 + $0x74] sm:$0xf0] }
 0x459   :  { %2636 = vmatpush.bf16.msra.mxu2 %v3864_v35  ;;  %2662 = vmatpush.bf16.msrb.mxu0 %v3868_v36  ;;  %v3480_v35 = vor.u32 %v4116_v29, %v3479_v28  ;;  %v3484_v36 = vor.u32 %v4112_v30, %v3481_v31 }
 0x45b   :  { %2622 = vmatpush.bf16.msra.mxu1 %v3640_v45  ;;  %2648 = vmatpush.bf16.msrb.mxu3 %v3644_v46  ;;  %v3448_v45 = vor.u32 %v4108_v40, %v3447_v39  ;;  %v3452_v46 = vor.u32 %v4104_v43, %v3449_v44 }
 0x45d   :  { %2637 = vmatpush.bf16.msra.mxu2 %v3832_v42  ;;  %2663 = vmatpush.bf16.msrb.mxu0 %v3836_v33 }
 0x45f   :  { %2623 = vmatpush.bf16.msra.mxu1 %v3608_v49  ;;  %2649 = vmatpush.bf16.msrb.mxu3 %v3612_v50 }
 0x461   :  { %2638 = vmatpush.bf16.msra.mxu2 %v3800_v55  ;;  %2664 = vmatpush.bf16.msrb.mxu0 %v3804_v57 }
 0x463   :  { %2624 = vmatpush.bf16.msra.mxu1 %v3576_v63  ;;  %2650 = vmatpush.bf16.msrb.mxu3 %v3580_v62 }
 0x465   :  { %2639 = vmatpush.bf16.msra.mxu2 %v3768_v4  ;;  %2665 = vmatpush.bf16.msrb.mxu0 %v3772_v5 }
 0x467   :  { %2625 = vmatpush.bf16.msra.mxu1 %v3544_v10  ;;  %2651 = vmatpush.bf16.msrb.mxu3 %v3548_v11 }
 0x469   :  { %2640 = vmatpush.bf16.msra.mxu2 %v3736_v16  ;;  %2666 = vmatpush.bf16.msrb.mxu0 %v3740_v19 }
 0x46b   :  { %2626 = vmatpush.bf16.msra.mxu1 %v3512_v24  ;;  %2652 = vmatpush.bf16.msrb.mxu3 %v3516_v27 }
 0x46d   :  { %2641 = vmatpush.bf16.msra.mxu2 %v3704_v32  ;;  %2667 = vmatpush.bf16.msrb.mxu0 %v3708_v34 }
 0x46f   :  { %2627 = vmatpush.bf16.msra.mxu1 %v3480_v35  ;;  %2653 = vmatpush.bf16.msrb.mxu3 %v3484_v36 }
 0x470   :  { %2642 = vmatmul.bf16.vlgmr.msra.gmra.mxu2 %v4641_v17  ;;  %2668 = vmatmul.bf16.vlgmr.msrb.gmra.mxu0 %v4641_v17 }
 0x473   :  { %2628 = vmatpush.bf16.msra.mxu1 %v3448_v45  ;;  %2654 = vmatpush.bf16.msrb.mxu3 %v3452_v46 }
 0x476   :  { %2629 = vmatmul.bf16.vlgmr.msra.gmra.mxu1 %v4646_v56  ;;  %2655 = vmatmul.bf16.vlgmr.msrb.gmra.mxu3 %v4646_v56  ;;  %v4668_v56 = vld [vmem:[%s4700_s13] sm:$0xff]  ;;  %s4453_s13 = smov [#allocation10]  }
 0x477   :  { %v1810_v38 = vperm.slane %v4668_v56, 1  ;;  %v1811_v48 = vperm.slane %v4668_v56, 2  ;;  %v1809_v52 = vperm.slane %v4668_v56, 0  ;;  %v1812_v57 = vperm.slane %v4668_v56, 3  ;;  %s2712_s15 = sshll.u32 %s4453_s13, 4  ;;  %s2713_s15 = int_to_ptr.vmem [resolvable:$true] %s2712_s15 }
 0x478   :  { %v1814_v24 = vperm.slane %v4668_v56, 5  ;;  %v1815_v27 = vperm.slane %v4668_v56, 6  ;;  %v1813_v31 = vperm.slane %v4668_v56, 4  ;;  %v1816_v36 = vperm.slane %v4668_v56, 7 }
 0x4ad   :  { %v2513_v47 = vpop.f32.mrf.mxu0 }
 0x4b3   :  { %v2474_v37 = vpop.f32.mrf.mxu1  ;;  %v2487_v41 = vpop.f32.mrf.mxu2 }
 0x4b4   :  { %v2475_v58 = vadd.f32 %v2474_v37, %v1809_v52 }
 0x4b5   :  { %v2515_v18 = vpop.f32.mrf.mxu0 }
 0x4b6   :  { %v2488_v0 = vadd.f32 %v2487_v41, %v2475_v58 }
 0x4b9   :  { %v2500_v17 = vpop.f32.mrf.mxu3 }
 0x4ba   :  { %v2501_v49 = vadd.f32 %v2500_v17, %v1810_v38 }
 0x4bb   :  { %v2476_v42 = vpop.f32.mrf.mxu1  ;;  %v2489_v33 = vpop.f32.mrf.mxu2 }
 0x4bc   :  { %v2514_v55 = vadd.f32 %v2513_v47, %v2501_v49 }
 0x4bd   :  { %v2565_v25 = vpop.f32.mrf.mxu0 }
 0x4be   :  { %4271 = vtanh.f32 %v2514_v55 }
 0x4c1   :  { %v2502_v26 = vpop.f32.mrf.mxu3 }
 0x4c3   :  { %v2526_v50 = vpop.f32.mrf.mxu1  ;;  %v2539_v51 = vpop.f32.mrf.mxu2 }
 0x4c4   :  { %v2527_v53 = vadd.f32 %v2526_v50, %v1811_v48  ;;  %v4272_v3 = vpop.eup %4271 }
 0x4c5   :  { %v2567_v54 = vpop.f32.mrf.mxu0  ;;  %v2689_v6 = vrot.slane %v4272_v3, 6 }
 0x4c6   :  { %v2540_v59 = vadd.f32 %v2539_v51, %v2527_v53 }
 0x4c8   :  { %4273 = vtanh.f32 %v2540_v59 }
 0x4c9   :  { %v2552_v60 = vpop.f32.mrf.mxu3 }
 0x4ca   :  { %v2553_v61 = vadd.f32 %v2552_v60, %v1812_v57 }
 0x4cb   :  { %v2528_v63 = vpop.f32.mrf.mxu1  ;;  %v2541_v62 = vpop.f32.mrf.mxu2 }
 0x4cc   :  { %v2566_v1 = vadd.f32 %v2565_v25, %v2553_v61 }
 0x4cd   :  { %v2617_v2 = vpop.f32.mrf.mxu0 }
 0x4ce   :  { %4275 = vtanh.f32 %v2566_v1  ;;  %v4274_v5 = vpop.eup %4273 }
 0x4cf   :  { %4277 = vtanh.f32 %v2488_v0  ;;  %v2690_v10 = vrot.slane %v4274_v5, 4 }
 0x4d1   :  { %v2554_v4 = vpop.f32.mrf.mxu3 }
 0x4d3   :  { %v2591_v7 = vpop.f32.mrf.mxu2  ;;  %v2578_v9 = vpop.f32.mrf.mxu1 }
 0x4d4   :  { %v4276_v8 = vpop.eup %4275  ;;  %v2579_v39 = vadd.f32 %v2578_v9, %v1813_v31 }
 0x4d5   :  { %v2691_v11 = vrot.slane %v4276_v8, 2  ;;  %v2619_v12 = vpop.f32.mrf.mxu0  ;;  %v4278_v13 = vpop.eup %4277 }
 0x4d6   :  { %v2696_v14 = vsel %vm2695_vm11, %v4278_v13, %v2689_v6  ;;  %v2592_v47 = vadd.f32 %v2591_v7, %v2579_v39 }
 0x4d7   :  { %v2698_v15 = vsel %vm2697_vm13, %v2690_v10, %v2691_v11 }
 0x4d8   :  { %v2699_v16 = vsel %vm1471_vm12, %v2696_v14, %v2698_v15 }
 0x4d9   :  { %2705 = vst [vmem:[#allocation10] sm:$0xff] %v2699_v16  ;;  %v2604_v19 = vpop.f32.mrf.mxu3 }
 0x4da   :  { %v2605_v28 = vadd.f32 %v2604_v19, %v1814_v24 }
 0x4db   :  { %v2593_v20 = vpop.f32.mrf.mxu2  ;;  %v2580_v21 = vpop.f32.mrf.mxu1 }
 0x4dc   :  { %v2618_v35 = vadd.f32 %v2617_v2, %v2605_v28 }
 0x4de   :  { %4279 = vtanh.f32 %v2618_v35 }
 0x4e1   :  { %v2606_v22 = vpop.f32.mrf.mxu3 }
 0x4e4   :  { %v4280_v41 = vpop.eup %4279 }
 0x4e5   :  { %v2692_v42 = vrot.slane %v4280_v41, 6 }
 0x4ed   :  { %v2669_v23 = vpop.f32.mrf.mxu0 }
 0x4f3   :  { %v2630_v29 = vpop.f32.mrf.mxu1  ;;  %v2643_v30 = vpop.f32.mrf.mxu2 }
 0x4f4   :  { %v2631_v32 = vadd.f32 %v2630_v29, %v1815_v27 }
 0x4f5   :  { %v2671_v34 = vpop.f32.mrf.mxu0 }
 0x4f6   :  { %v2644_v40 = vadd.f32 %v2643_v30, %v2631_v32 }
 0x4f8   :  { %4281 = vtanh.f32 %v2644_v40 }
 0x4f9   :  { %v2656_v43 = vpop.f32.mrf.mxu3 }
 0x4fa   :  { %v2657_v44 = vadd.f32 %v2656_v43, %v1816_v36 }
 0x4fb   :  { %v2632_v45 = vpop.f32.mrf.mxu1  ;;  %v2645_v46 = vpop.f32.mrf.mxu2 }
 0x4fc   :  { %v2670_v37 = vadd.f32 %v2669_v23, %v2657_v44 }
 0x4fe   :  { %4283 = vtanh.f32 %v2670_v37  ;;  %v4282_v17 = vpop.eup %4281 }
 0x4ff   :  { %4285 = vtanh.f32 %v2592_v47  ;;  %v2693_v56 = vrot.slane %v4282_v17, 4 }
 0x501   :  { %v2658_v18 = vpop.f32.mrf.mxu3 }
 0x504   :  { %v4284_v33 = vpop.eup %4283 }
 0x505   :  { %v2694_v25 = vrot.slane %v4284_v33, 2  ;;  %v4286_v38 = vpop.eup %4285 }
 0x506   :  { %v2700_v48 = vsel %vm2695_vm11, %v4286_v38, %v2692_v42 }
 0x507   :  { %v2701_v26 = vsel %vm2697_vm13, %v2693_v56, %v2694_v25 }
 0x508   :  { %v2702_v49 = vsel %vm1471_vm12, %v2700_v48, %v2701_v26 }
 0x509   :  { %2706 = vst [vmem:[#allocation10 + $0x8] sm:$0xff] %v2702_v49 }
 0x50a   :  { %2717 = dma.vmem_to_hbm [thread:$0]  %s2713_s15, 256, %s2715_s22, [#allocation4]  }
 0x50b   :  { %4437 = dma.done.wait [#allocation4], 256  }
 0x50c   :  { %4438 = vsyncadd [#allocation4], 4294967040 }
 0x50d   :  { %4439 = dma.done.wait [#allocation12], 32  }
 0x50e   :  { %4440 = vsyncadd [#allocation12], 4294967264 }
 0x50f   :  { %2737 = vsyncpa [#allocation3], 1 }
 0x510   :  { %2738 = vsyncpa [#allocation6], 1 }
 0x511   :  { %2739 = vsyncpa [#allocation9], 1 }
 0x512   :  { %2740 = vsyncpa [#allocation4], 1 }
 0x513   :  { %2741 = vsyncpa [#allocation12], 1 }

</bundles_post_ra>
